<compile_context>
chip_gen: v5e
topology: v5e:2x2
jax: 0.10.0
libtpu: 0.0.40
codegen_flags: <defaults>
</compile_context>

<pallas_src>
import jax
import jax.numpy as jnp
from jax.experimental import pallas as pl
from jax.experimental.pallas import tpu as pltpu

_VMEM_LIMIT = 32 * 1024 * 1024   # explicit, portable across v5e/v6e/v7x
_NEG = -1e30                     # padding value for unused fc2 logit lanes
N_CLASSES = 10


def _round_up(x, m):
    return (x + m - 1) // m * m


def _pick_tile(n, align, candidates):
    """Pad n up to `align`, then pick the largest candidate tile that divides it."""
    n_pad = _round_up(max(n, align), align)
    for c in candidates:
        if c <= n_pad and n_pad % c == 0:
            return n_pad, c
    return n_pad, align


# ---------------------------------------------------------------------------
# Conv as a lane-dense matmul:  out(Cout, M) = relu(W(Cout,K) @ patches(K,M) + b)
# ---------------------------------------------------------------------------
def _conv_matmul_relu_kernel(w_ref, p_ref, b_ref, o_ref):
    acc = jnp.dot(w_ref[...], p_ref[...], preferred_element_type=jnp.float32)
    acc = jnp.maximum(acc + b_ref[...], 0.0)
    o_ref[...] = acc.astype(o_ref.dtype)


def conv2d_relu(a_cnhw, w_mat, b_col, kh, kw):
    """relu(valid conv2d) on channel-major activations.

    a_cnhw: (Cin, N, H, W); w_mat: (Cout, K_pad) bf16, K_pad = roundup(Cin*kh*kw, 16)
    (padded with zero columns); b_col: (Cout, 1) f32.
    Returns (Cout, N, Ho, Wo) in bf16 (same channel-major layout).
    """
    Cin, N, H, W = a_cnhw.shape
    Cout, K_pad = w_mat.shape
    Ho, Wo = H - kh + 1, W - kw + 1
    K = Cin * kh * kw
    M = N * Ho * Wo

    # im2col directly in (K, M) layout: rows ordered (c, kh, kw) to match
    # torch weight.reshape(Cout, -1); columns ordered (n, ho, wo).
    patches = jnp.stack(
        [a_cnhw[:, :, i:i + Ho, j:j + Wo] for i in range(kh) for j in range(kw)],
        axis=1).reshape(K, M).astype(jnp.bfloat16)

    M_pad, tm = _pick_tile(M, 128, (512, 256, 128))
    patches = jnp.pad(patches, ((0, K_pad - K), (0, M_pad - M)))

    flops = 2 * Cout * K_pad * M_pad
    bytes_accessed = (w_mat.size * 2 + patches.size * 2 + b_col.size * 4
                      + Cout * M_pad * 2)

    out = pl.pallas_call(
        _conv_matmul_relu_kernel,
        out_shape=jax.ShapeDtypeStruct((Cout, M_pad), jnp.bfloat16),
        grid=(M_pad // tm,),
        in_specs=[
            pl.BlockSpec((Cout, K_pad), lambda i: (0, 0)),   # weights stay resident
            pl.BlockSpec((K_pad, tm), lambda i: (0, i)),     # patch tile, pipelined
            pl.BlockSpec((Cout, 1), lambda i: (0, 0)),       # bias
        ],
        out_specs=pl.BlockSpec((Cout, tm), lambda i: (0, i)),
        compiler_params=pltpu.CompilerParams(
            dimension_semantics=("parallel",),
            vmem_limit_bytes=_VMEM_LIMIT),
        cost_estimate=pl.CostEstimate(
            flops=flops, transcendentals=0, bytes_accessed=bytes_accessed),
    )(w_mat, patches, b_col)

    return out[:, :M].reshape(Cout, N, Ho, Wo)


def max_pool_2x2(a):
    # Pools the last two dims; works for both (C, N, H, W) and (N, C, H, W).
    d0, d1, H, W = a.shape
    return a.reshape(d0, d1, H // 2, 2, W // 2, 2).max(axis=(3, 5))


# ---------------------------------------------------------------------------
# Fused FC head: log_softmax(relu(h @ W1 + b1) @ W2 + b2), fc2 padded to 128 lanes
# ---------------------------------------------------------------------------
def _fc_head_kernel(h_ref, w1_ref, b1_ref, w2_ref, b2_ref, o_ref):
    z1 = jnp.dot(h_ref[...], w1_ref[...], preferred_element_type=jnp.float32)
    z1 = jnp.maximum(z1 + b1_ref[...], 0.0)
    logits = jnp.dot(z1.astype(jnp.bfloat16), w2_ref[...],
                     preferred_element_type=jnp.float32) + b2_ref[...]
    m = jnp.max(logits, axis=-1, keepdims=True)          # padded lanes are -1e30
    shifted = logits - m
    lse = jnp.log(jnp.sum(jnp.exp(shifted), axis=-1, keepdims=True))
    o_ref[...] = (shifted - lse).astype(o_ref.dtype)


def fc_head(h, w1t, b1_row, w2t_pad, b2_row_pad, n_classes):
    B, Din = h.shape
    Dh = w1t.shape[1]
    Dout = w2t_pad.shape[1]

    B_pad, tb = _pick_tile(B, 16, (256, 128, 64, 32, 16))
    h_pad = jnp.pad(h.astype(jnp.bfloat16), ((0, B_pad - B), (0, 0)))

    flops = 2 * B_pad * (Din * Dh + Dh * Dout)
    bytes_accessed = (h_pad.size * 2 + w1t.size * 2 + w2t_pad.size * 2
                      + (b1_row.size + b2_row_pad.size) * 4 + B_pad * Dout * 4)

    out = pl.pallas_call(
        _fc_head_kernel,
        out_shape=jax.ShapeDtypeStruct((B_pad, Dout), jnp.float32),
        grid=(B_pad // tb,),
        in_specs=[
            pl.BlockSpec((tb, Din), lambda i: (i, 0)),
            pl.BlockSpec((Din, Dh), lambda i: (0, 0)),
            pl.BlockSpec((1, Dh), lambda i: (0, 0)),
            pl.BlockSpec((Dh, Dout), lambda i: (0, 0)),
            pl.BlockSpec((1, Dout), lambda i: (0, 0)),
        ],
        out_specs=pl.BlockSpec((tb, Dout), lambda i: (i, 0)),
        compiler_params=pltpu.CompilerParams(
            dimension_semantics=("parallel",),
            vmem_limit_bytes=_VMEM_LIMIT),
        cost_estimate=pl.CostEstimate(
            flops=flops, transcendentals=2 * B_pad * Dout,
            bytes_accessed=bytes_accessed),
    )(h_pad, w1t, b1_row, w2t_pad, b2_row_pad)

    return out[:B, :n_classes]


# ---------------------------------------------------------------------------
# Parameter preparation (one-time layout / dtype work, NOT per forward call)
# ---------------------------------------------------------------------------
def prepare_params(params):
    def conv_w(w):
        Cout, Cin, KH, KW = w.shape
        K = Cin * KH * KW
        K_pad = _round_up(K, 16)
        return jnp.pad(w.reshape(Cout, K), ((0, 0), (0, K_pad - K))
                       ).astype(jnp.bfloat16)

    d2 = _round_up(N_CLASSES, 128)
    return {
        "w1": conv_w(params["w1"]),
        "b1": params["b1"].reshape(-1, 1).astype(jnp.float32),
        "w2": conv_w(params["w2"]),
        "b2": params["b2"].reshape(-1, 1).astype(jnp.float32),
        "w3": conv_w(params["w3"]),
        "b3": params["b3"].reshape(-1, 1).astype(jnp.float32),
        "wfc1_t": params["wfc1"].T.astype(jnp.bfloat16),                 # (576, 256)
        "bfc1": params["bfc1"].reshape(1, -1).astype(jnp.float32),       # (1, 256)
        "wfc2_t": jnp.pad(params["wfc2"].T, ((0, 0), (0, d2 - N_CLASSES))
                          ).astype(jnp.bfloat16),                        # (256, 128)
        "bfc2": jnp.pad(params["bfc2"], (0, d2 - N_CLASSES),
                        constant_values=_NEG).reshape(1, -1).astype(jnp.float32),
    }


def primer_cnn_forward(prep, x):
    """x: (N, 1, 28, 28) NCHW -> (N, 10) log-probs. Inference mode (dropout = id)."""
    a = jnp.transpose(x, (1, 0, 2, 3))                 # (Cin, N, H, W), channel-major
    a = conv2d_relu(a, prep["w1"], prep["b1"], 5, 5)   # (32, N, 24, 24)
    a = conv2d_relu(a, prep["w2"], prep["b2"], 5, 5)   # (32, N, 20, 20)
    a = max_pool_2x2(a)                                # (32, N, 10, 10)
    a = conv2d_relu(a, prep["w3"], prep["b3"], 5, 5)   # (64, N, 6, 6)
    a = max_pool_2x2(a)                                # (64, N, 3, 3)
    # torch x.view(-1, 576) flattens NCHW -> (N, C*H*W)
    h = jnp.transpose(a, (1, 0, 2, 3)).reshape(x.shape[0], -1)
    return fc_head(h, prep["wfc1_t"], prep["bfc1"],
                   prep["wfc2_t"], prep["bfc2"], N_CLASSES)


# ---------------------------------------------------------------------------
# Init + plain-XLA reference
# ---------------------------------------------------------------------------
def init_params(key):
    def u(k, shape, fan_in):
        bound = 1.0 / jnp.sqrt(float(fan_in))
        return jax.random.uniform(k, shape, jnp.float32, -bound, bound)

    ks = jax.random.split(key, 10)
    return {
        "w1": u(ks[0], (32, 1, 5, 5), 1 * 25),
        "b1": u(ks[1], (32,), 1 * 25),
        "w2": u(ks[2], (32, 32, 5, 5), 32 * 25),
        "b2": u(ks[3], (32,), 32 * 25),
        "w3": u(ks[4], (64, 32, 5, 5), 32 * 25),
        "b3": u(ks[5], (64,), 32 * 25),
        "wfc1": u(ks[6], (256, 576), 576),
        "bfc1": u(ks[7], (256,), 576),
        "wfc2": u(ks[8], (10, 256), 256),
        "bfc2": u(ks[9], (10,), 256),
    }


def _reference_forward(params, x):
    def conv(x, w, b):
        y = jax.lax.conv_general_dilated(
            x, w, (1, 1), "VALID", dimension_numbers=("NCHW", "OIHW", "NCHW"))
        return y + b[None, :, None, None]

    h = jax.nn.relu(conv(x, params["w1"], params["b1"]))
    h = jax.nn.relu(max_pool_2x2(conv(h, params["w2"], params["b2"])))
    h = jax.nn.relu(max_pool_2x2(conv(h, params["w3"], params["b3"])))
    h = h.reshape(h.shape[0], 576)
    h = jax.nn.relu(h @ params["wfc1"].T + params["bfc1"])
    logits = h @ params["wfc2"].T + params["bfc2"]
    return jax.nn.log_softmax(logits, axis=1)


if __name__ == "__main__":
    key = jax.random.PRNGKey(0)
    pkey, xkey = jax.random.split(key)
    params = init_params(pkey)
    # fc1 expects 3*3*64 features, which pins the input to 28x28 (MNIST).
    x = jax.random.normal(xkey, (2, 1, 28, 28), dtype=jnp.float32)

    prep = prepare_params(params)
    fwd = jax.jit(primer_cnn_forward)
    out = jax.block_until_ready(fwd(prep, x))
    ref = jax.block_until_ready(_reference_forward(params, x))

    assert out.shape == (2, 10)
    assert bool(jnp.all(jnp.isfinite(out)))
    # bf16 MXU inputs (f32 accumulation / activations / log_softmax) -> loosened
    # tolerance vs. the pure-f32 XLA reference.
    max_err = float(jnp.max(jnp.abs(out - ref)))
    assert jnp.allclose(out, ref, atol=5e-2, rtol=5e-2), f"max abs err {max_err}"
    print("KERNEL_OK")
</pallas_src>

<mosaic_0001>
module attributes {stable_mosaic.version = 11 : i64} {
  func.func @_conv_matmul_relu_kernel(%arg0: i32, %arg1: memref<32x32xbf16, #tpu.memory_space<vmem>>, %arg2: memref<32x128xbf16, #tpu.memory_space<vmem>>, %arg3: memref<32x1xf32, #tpu.memory_space<vmem>>, %arg4: memref<32x128xbf16, #tpu.memory_space<vmem>>) attributes {dimension_semantics = [#tpu.dimension_semantics<parallel>], iteration_bounds = array<i64: 9>, scalar_prefetch = 0 : i64, scratch_operands = 0 : i64, tpu.core_type = #tpu.core_type<tc>, window_params = [{pipeline_mode = #tpu.pipeline_mode<synchronous>, transform_indices = @transform_0, window_bounds = array<i64: 32, 32>}, {transform_indices = @transform_1, window_bounds = array<i64: 32, 128>}, {pipeline_mode = #tpu.pipeline_mode<synchronous>, transform_indices = @transform_2, window_bounds = array<i64: 32, 1>}, {transform_indices = @transform_3, window_bounds = array<i64: 32, 128>}]} {
    %c0 = arith.constant 0 : index
    %c0_0 = arith.constant 0 : index
    %0 = vector.load %arg1[%c0, %c0_0] : memref<32x32xbf16, #tpu.memory_space<vmem>>, vector<32x32xbf16>
    %c0_1 = arith.constant 0 : index
    %c0_2 = arith.constant 0 : index
    %1 = vector.load %arg2[%c0_1, %c0_2] : memref<32x128xbf16, #tpu.memory_space<vmem>>, vector<32x128xbf16>
    %cst = arith.constant dense<0.000000e+00> : vector<32x128xf32>
    %2 = tpu.matmul %0, %1, %cst {dimension_numbers = #tpu.dot_dimension_numbers<[1], [0], [0], [1], [0, 0, 1, 1], [], []>} : vector<32x32xbf16>, vector<32x128xbf16>, vector<32x128xf32> -> vector<32x128xf32>
    %c0_3 = arith.constant 0 : index
    %c0_4 = arith.constant 0 : index
    %3 = vector.load %arg3[%c0_3, %c0_4] : memref<32x1xf32, #tpu.memory_space<vmem>>, vector<32x1xf32>
    %4 = vector.broadcast %3 : vector<32x1xf32> to vector<32x128xf32>
    %5 = arith.addf %2, %4 : vector<32x128xf32>
    %cst_5 = arith.constant 0.000000e+00 : f32
    %6 = vector.broadcast %cst_5 : f32 to vector<32x128xf32>
    %7 = arith.maximumf %5, %6 : vector<32x128xf32>
    %8 = arith.truncf %7 : vector<32x128xf32> to vector<32x128xbf16>
    %c0_6 = arith.constant 0 : index
    %c0_7 = arith.constant 0 : index
    %9 = vector.load %arg4[%c0_6, %c0_7] : memref<32x128xbf16, #tpu.memory_space<vmem>>, vector<32x128xbf16>
    tpu.vector_store %arg4[%c0_6, %c0_7], %8 {strides = array<i32>} : memref<32x128xbf16, #tpu.memory_space<vmem>>, vector<32x128xbf16>,
    return
  }
  func.func @transform_0(%arg0: i32) -> (i32, i32) {
    %c0_i32 = arith.constant 0 : i32
    %c0_i32_0 = arith.constant 0 : i32
    %c0_i32_1 = arith.constant 0 : i32
    return %c0_i32, %c0_i32_0 : i32, i32
  }
  func.func @transform_1(%arg0: i32) -> (i32, i32) {
    %c0_i32 = arith.constant 0 : i32
    %c0_i32_0 = arith.constant 0 : i32
    return %c0_i32, %arg0 : i32, i32
  }
  func.func @transform_2(%arg0: i32) -> (i32, i32) {
    %c0_i32 = arith.constant 0 : i32
    %c0_i32_0 = arith.constant 0 : i32
    %c0_i32_1 = arith.constant 0 : i32
    return %c0_i32, %c0_i32_0 : i32, i32
  }
  func.func @transform_3(%arg0: i32) -> (i32, i32) {
    %c0_i32 = arith.constant 0 : i32
    %c0_i32_0 = arith.constant 0 : i32
    return %c0_i32, %arg0 : i32, i32
  }
}

module attributes {stable_mosaic.version = 11 : i64} {
  func.func @_conv_matmul_relu_kernel(%arg0: i32, %arg1: memref<32x800xbf16, #tpu.memory_space<vmem>>, %arg2: memref<800x128xbf16, #tpu.memory_space<vmem>>, %arg3: memref<32x1xf32, #tpu.memory_space<vmem>>, %arg4: memref<32x128xbf16, #tpu.memory_space<vmem>>) attributes {dimension_semantics = [#tpu.dimension_semantics<parallel>], iteration_bounds = array<i64: 7>, scalar_prefetch = 0 : i64, scratch_operands = 0 : i64, tpu.core_type = #tpu.core_type<tc>, window_params = [{pipeline_mode = #tpu.pipeline_mode<synchronous>, transform_indices = @transform_0, window_bounds = array<i64: 32, 800>}, {transform_indices = @transform_1, window_bounds = array<i64: 800, 128>}, {pipeline_mode = #tpu.pipeline_mode<synchronous>, transform_indices = @transform_2, window_bounds = array<i64: 32, 1>}, {transform_indices = @transform_3, window_bounds = array<i64: 32, 128>}]} {
    %c0 = arith.constant 0 : index
    %c0_0 = arith.constant 0 : index
    %0 = vector.load %arg1[%c0, %c0_0] : memref<32x800xbf16, #tpu.memory_space<vmem>>, vector<32x800xbf16>
    %c0_1 = arith.constant 0 : index
    %c0_2 = arith.constant 0 : index
    %1 = vector.load %arg2[%c0_1, %c0_2] : memref<800x128xbf16, #tpu.memory_space<vmem>>, vector<800x128xbf16>
    %cst = arith.constant dense<0.000000e+00> : vector<32x128xf32>
    %2 = tpu.matmul %0, %1, %cst {dimension_numbers = #tpu.dot_dimension_numbers<[1], [0], [0], [1], [0, 0, 1, 1], [], []>} : vector<32x800xbf16>, vector<800x128xbf16>, vector<32x128xf32> -> vector<32x128xf32>
    %c0_3 = arith.constant 0 : index
    %c0_4 = arith.constant 0 : index
    %3 = vector.load %arg3[%c0_3, %c0_4] : memref<32x1xf32, #tpu.memory_space<vmem>>, vector<32x1xf32>
    %4 = vector.broadcast %3 : vector<32x1xf32> to vector<32x128xf32>
    %5 = arith.addf %2, %4 : vector<32x128xf32>
    %cst_5 = arith.constant 0.000000e+00 : f32
    %6 = vector.broadcast %cst_5 : f32 to vector<32x128xf32>
    %7 = arith.maximumf %5, %6 : vector<32x128xf32>
    %8 = arith.truncf %7 : vector<32x128xf32> to vector<32x128xbf16>
    %c0_6 = arith.constant 0 : index
    %c0_7 = arith.constant 0 : index
    %9 = vector.load %arg4[%c0_6, %c0_7] : memref<32x128xbf16, #tpu.memory_space<vmem>>, vector<32x128xbf16>
    tpu.vector_store %arg4[%c0_6, %c0_7], %8 {strides = array<i32>} : memref<32x128xbf16, #tpu.memory_space<vmem>>, vector<32x128xbf16>,
    return
  }
  func.func @transform_0(%arg0: i32) -> (i32, i32) {
    %c0_i32 = arith.constant 0 : i32
    %c0_i32_0 = arith.constant 0 : i32
    %c0_i32_1 = arith.constant 0 : i32
    return %c0_i32, %c0_i32_0 : i32, i32
  }
  func.func @transform_1(%arg0: i32) -> (i32, i32) {
    %c0_i32 = arith.constant 0 : i32
    %c0_i32_0 = arith.constant 0 : i32
    return %c0_i32, %arg0 : i32, i32
  }
  func.func @transform_2(%arg0: i32) -> (i32, i32) {
    %c0_i32 = arith.constant 0 : i32
    %c0_i32_0 = arith.constant 0 : i32
    %c0_i32_1 = arith.constant 0 : i32
    return %c0_i32, %c0_i32_0 : i32, i32
  }
  func.func @transform_3(%arg0: i32) -> (i32, i32) {
    %c0_i32 = arith.constant 0 : i32
    %c0_i32_0 = arith.constant 0 : i32
    return %c0_i32, %arg0 : i32, i32
  }
}

module attributes {stable_mosaic.version = 11 : i64} {
  func.func @_conv_matmul_relu_kernel(%arg0: i32, %arg1: memref<64x800xbf16, #tpu.memory_space<vmem>>, %arg2: memref<800x128xbf16, #tpu.memory_space<vmem>>, %arg3: memref<64x1xf32, #tpu.memory_space<vmem>>, %arg4: memref<64x128xbf16, #tpu.memory_space<vmem>>) attributes {dimension_semantics = [#tpu.dimension_semantics<parallel>], iteration_bounds = array<i64: 1>, scalar_prefetch = 0 : i64, scratch_operands = 0 : i64, tpu.core_type = #tpu.core_type<tc>, window_params = [{pipeline_mode = #tpu.pipeline_mode<synchronous>, transform_indices = @transform_0, window_bounds = array<i64: 64, 800>}, {transform_indices = @transform_1, window_bounds = array<i64: 800, 128>}, {pipeline_mode = #tpu.pipeline_mode<synchronous>, transform_indices = @transform_2, window_bounds = array<i64: 64, 1>}, {transform_indices = @transform_3, window_bounds = array<i64: 64, 128>}]} {
    %c0 = arith.constant 0 : index
    %c0_0 = arith.constant 0 : index
    %0 = vector.load %arg1[%c0, %c0_0] : memref<64x800xbf16, #tpu.memory_space<vmem>>, vector<64x800xbf16>
    %c0_1 = arith.constant 0 : index
    %c0_2 = arith.constant 0 : index
    %1 = vector.load %arg2[%c0_1, %c0_2] : memref<800x128xbf16, #tpu.memory_space<vmem>>, vector<800x128xbf16>
    %cst = arith.constant dense<0.000000e+00> : vector<64x128xf32>
    %2 = tpu.matmul %0, %1, %cst {dimension_numbers = #tpu.dot_dimension_numbers<[1], [0], [0], [1], [0, 0, 1, 1], [], []>} : vector<64x800xbf16>, vector<800x128xbf16>, vector<64x128xf32> -> vector<64x128xf32>
    %c0_3 = arith.constant 0 : index
    %c0_4 = arith.constant 0 : index
    %3 = vector.load %arg3[%c0_3, %c0_4] : memref<64x1xf32, #tpu.memory_space<vmem>>, vector<64x1xf32>
    %4 = vector.broadcast %3 : vector<64x1xf32> to vector<64x128xf32>
    %5 = arith.addf %2, %4 : vector<64x128xf32>
    %cst_5 = arith.constant 0.000000e+00 : f32
    %6 = vector.broadcast %cst_5 : f32 to vector<64x128xf32>
    %7 = arith.maximumf %5, %6 : vector<64x128xf32>
    %8 = arith.truncf %7 : vector<64x128xf32> to vector<64x128xbf16>
    %c0_6 = arith.constant 0 : index
    %c0_7 = arith.constant 0 : index
    %9 = vector.load %arg4[%c0_6, %c0_7] : memref<64x128xbf16, #tpu.memory_space<vmem>>, vector<64x128xbf16>
    tpu.vector_store %arg4[%c0_6, %c0_7], %8 {strides = array<i32>} : memref<64x128xbf16, #tpu.memory_space<vmem>>, vector<64x128xbf16>,
    return
  }
  func.func @transform_0(%arg0: i32) -> (i32, i32) {
    %c0_i32 = arith.constant 0 : i32
    %c0_i32_0 = arith.constant 0 : i32
    %c0_i32_1 = arith.constant 0 : i32
    return %c0_i32, %c0_i32_0 : i32, i32
  }
  func.func @transform_1(%arg0: i32) -> (i32, i32) {
    %c0_i32 = arith.constant 0 : i32
    %c0_i32_0 = arith.constant 0 : i32
    return %c0_i32, %arg0 : i32, i32
  }
  func.func @transform_2(%arg0: i32) -> (i32, i32) {
    %c0_i32 = arith.constant 0 : i32
    %c0_i32_0 = arith.constant 0 : i32
    %c0_i32_1 = arith.constant 0 : i32
    return %c0_i32, %c0_i32_0 : i32, i32
  }
  func.func @transform_3(%arg0: i32) -> (i32, i32) {
    %c0_i32 = arith.constant 0 : i32
    %c0_i32_0 = arith.constant 0 : i32
    return %c0_i32, %arg0 : i32, i32
  }
}

module attributes {stable_mosaic.version = 11 : i64} {
  func.func @_fc_head_kernel(%arg0: i32, %arg1: memref<16x576xbf16, #tpu.memory_space<vmem>>, %arg2: memref<576x256xbf16, #tpu.memory_space<vmem>>, %arg3: memref<1x256xf32, #tpu.memory_space<vmem>>, %arg4: memref<256x128xbf16, #tpu.memory_space<vmem>>, %arg5: memref<1x128xf32, #tpu.memory_space<vmem>>, %arg6: memref<16x128xf32, #tpu.memory_space<vmem>>) attributes {dimension_semantics = [#tpu.dimension_semantics<parallel>], iteration_bounds = array<i64: 1>, scalar_prefetch = 0 : i64, scratch_operands = 0 : i64, tpu.core_type = #tpu.core_type<tc>, window_params = [{transform_indices = @transform_0, window_bounds = array<i64: 16, 576>}, {pipeline_mode = #tpu.pipeline_mode<synchronous>, transform_indices = @transform_1, window_bounds = array<i64: 576, 256>}, {pipeline_mode = #tpu.pipeline_mode<synchronous>, transform_indices = @transform_2, window_bounds = array<i64: 1, 256>}, {pipeline_mode = #tpu.pipeline_mode<synchronous>, transform_indices = @transform_3, window_bounds = array<i64: 256, 128>}, {pipeline_mode = #tpu.pipeline_mode<synchronous>, transform_indices = @transform_4, window_bounds = array<i64: 1, 128>}, {transform_indices = @transform_5, window_bounds = array<i64: 16, 128>}]} {
    %c0 = arith.constant 0 : index
    %c0_0 = arith.constant 0 : index
    %0 = vector.load %arg1[%c0, %c0_0] : memref<16x576xbf16, #tpu.memory_space<vmem>>, vector<16x576xbf16>
    %c0_1 = arith.constant 0 : index
    %c0_2 = arith.constant 0 : index
    %1 = vector.load %arg2[%c0_1, %c0_2] : memref<576x256xbf16, #tpu.memory_space<vmem>>, vector<576x256xbf16>
    %cst = arith.constant dense<0.000000e+00> : vector<16x256xf32>
    %2 = tpu.matmul %0, %1, %cst {dimension_numbers = #tpu.dot_dimension_numbers<[1], [0], [0], [1], [0, 0, 1, 1], [], []>} : vector<16x576xbf16>, vector<576x256xbf16>, vector<16x256xf32> -> vector<16x256xf32>
    %c0_3 = arith.constant 0 : index
    %c0_4 = arith.constant 0 : index
    %3 = vector.load %arg3[%c0_3, %c0_4] : memref<1x256xf32, #tpu.memory_space<vmem>>, vector<1x256xf32>
    %4 = vector.broadcast %3 : vector<1x256xf32> to vector<16x256xf32>
    %5 = arith.addf %2, %4 : vector<16x256xf32>
    %cst_5 = arith.constant 0.000000e+00 : f32
    %6 = vector.broadcast %cst_5 : f32 to vector<16x256xf32>
    %7 = arith.maximumf %5, %6 : vector<16x256xf32>
    %8 = arith.truncf %7 : vector<16x256xf32> to vector<16x256xbf16>
    %c0_6 = arith.constant 0 : index
    %c0_7 = arith.constant 0 : index
    %9 = vector.load %arg4[%c0_6, %c0_7] : memref<256x128xbf16, #tpu.memory_space<vmem>>, vector<256x128xbf16>
    %cst_8 = arith.constant dense<0.000000e+00> : vector<16x128xf32>
    %10 = tpu.matmul %8, %9, %cst_8 {dimension_numbers = #tpu.dot_dimension_numbers<[1], [0], [0], [1], [0, 0, 1, 1], [], []>} : vector<16x256xbf16>, vector<256x128xbf16>, vector<16x128xf32> -> vector<16x128xf32>
    %c0_9 = arith.constant 0 : index
    %c0_10 = arith.constant 0 : index
    %11 = vector.load %arg5[%c0_9, %c0_10] : memref<1x128xf32, #tpu.memory_space<vmem>>, vector<1x128xf32>
    %12 = vector.broadcast %11 : vector<1x128xf32> to vector<16x128xf32>
    %13 = arith.addf %10, %12 : vector<16x128xf32>
    %cst_11 = arith.constant dense<0xFF800000> : vector<16xf32>
    %14 = vector.multi_reduction <maximumf>, %13, %cst_11 [1] : vector<16x128xf32> to vector<16xf32>
    %15 = vector.shape_cast %14 : vector<16xf32> to vector<16x1xf32>
    %16 = vector.broadcast %15 : vector<16x1xf32> to vector<16x128xf32>
    %17 = arith.subf %13, %16 : vector<16x128xf32>
    %18 = math.exp %17 : vector<16x128xf32>
    %cst_12 = arith.constant dense<0.000000e+00> : vector<16xf32>
    %19 = vector.multi_reduction <add>, %18, %cst_12 [1] : vector<16x128xf32> to vector<16xf32>
    %20 = vector.shape_cast %19 : vector<16xf32> to vector<16x1xf32>
    %21 = math.log %20 : vector<16x1xf32>
    %22 = vector.broadcast %21 : vector<16x1xf32> to vector<16x128xf32>
    %23 = arith.subf %17, %22 : vector<16x128xf32>
    %c0_13 = arith.constant 0 : index
    %c0_14 = arith.constant 0 : index
    %24 = vector.load %arg6[%c0_13, %c0_14] : memref<16x128xf32, #tpu.memory_space<vmem>>, vector<16x128xf32>
    tpu.vector_store %arg6[%c0_13, %c0_14], %23 {strides = array<i32>} : memref<16x128xf32, #tpu.memory_space<vmem>>, vector<16x128xf32>,
    return
  }
  func.func @transform_0(%arg0: i32) -> (i32, i32) {
    %c0_i32 = arith.constant 0 : i32
    %c0_i32_0 = arith.constant 0 : i32
    return %arg0, %c0_i32 : i32, i32
  }
  func.func @transform_1(%arg0: i32) -> (i32, i32) {
    %c0_i32 = arith.constant 0 : i32
    %c0_i32_0 = arith.constant 0 : i32
    %c0_i32_1 = arith.constant 0 : i32
    return %c0_i32, %c0_i32_0 : i32, i32
  }
  func.func @transform_2(%arg0: i32) -> (i32, i32) {
    %c0_i32 = arith.constant 0 : i32
    %c0_i32_0 = arith.constant 0 : i32
    %c0_i32_1 = arith.constant 0 : i32
    return %c0_i32, %c0_i32_0 : i32, i32
  }
  func.func @transform_3(%arg0: i32) -> (i32, i32) {
    %c0_i32 = arith.constant 0 : i32
    %c0_i32_0 = arith.constant 0 : i32
    %c0_i32_1 = arith.constant 0 : i32
    return %c0_i32, %c0_i32_0 : i32, i32
  }
  func.func @transform_4(%arg0: i32) -> (i32, i32) {
    %c0_i32 = arith.constant 0 : i32
    %c0_i32_0 = arith.constant 0 : i32
    %c0_i32_1 = arith.constant 0 : i32
    return %c0_i32, %c0_i32_0 : i32, i32
  }
  func.func @transform_5(%arg0: i32) -> (i32, i32) {
    %c0_i32 = arith.constant 0 : i32
    %c0_i32_0 = arith.constant 0 : i32
    return %arg0, %c0_i32 : i32, i32
  }
}

</mosaic_0001>

<bundles_post_ra>
// kernel: primer_cnn_forward.4
= control target key start
LH: loop header
LB: loop body
LE: loop exit
PB: predicated region body
PF: predicated region fallthrough
CT: control target
= control target key end

     0   :  { %8 = vsyncpa [#allocation3], 0  ;;  %s632_s12 = smov 0   ;;  %s634_s13 = smov 0   ;;  %s732_s0 = inlined_call_operand.hbm [shape: bf16[32,32], index: 0, kind: input, shape index: {}]   ;;  %s733_s1 = inlined_call_operand.vmem [shape: bf16[32,1152], index: 1, kind: input, shape index: {}]   ;;  %s734_s2 = inlined_call_operand.vmem [shape: f32[32,1], index: 2, kind: input, shape index: {}]   ;;  %s735_s3 = inlined_call_operand.vmem [shape: bf16[32,1152], index: 3, kind: output, shape index: {}]  }
   0x1   :  { %s636_s14 = smov 0  }
   0x2 LB: > { %s648_s15 = sadd.s32 4294967295, %s606_s14   ;;  %s651_s16 = sadd.s32 1, %s606_s14   ;;  %s606_s14 = sphi %s636_s14, %s741_s14   ;;  %s602_s13 = sphi %s634_s13, %s740_s13   ;;  %s598_s12 = sphi %s632_s12, %s739_s12  }
   0x3   : > { %s39_s17 = ssub.s32 %s606_s14, %s651_s16  ;;  %s42_s18 = sadd.s32 1, %s602_s13 }
   0x4   : > { %p40_p0 = scmp.eq.s32.totalorder %s39_s17, 0  ;;  %p49_p1 = scmp.ne.s32.totalorder %s602_s13, %s598_s12 }
   0x5   : > { %p50_p2 = scmp.eq.s32.totalorder %s606_s14, 0  ;;  %p100_p3 = scmp.eq.s32.totalorder %s648_s15, 8 }
   0x6   : > { %s661_s19 = scalar_select %p40_p0, %s602_s13, %s42_s18  }
   0x7   : > { %p663_p4 = por %p50_p2, %p49_p1  ;;  %p667_p5 = por %p100_p3, %p49_p1 }
   0x8   : > { %p462_p6 = scmp.ge.s32.totalorder %s606_s14, 1  ;;  %p113_p7 = scmp.lt.s32.totalorder %s606_s14, 10 }
   0x9   : > { %p518_p8 = scmp.eq.s32.totalorder %s648_s15, 0  ;;  %s124_s25 = sshll.u32 %s732_s0, 4  ;;  %s125_s25 = int_to_ptr.hbm [resolvable:$true] %s124_s25 }
   0xa   : > { %p674_p9 = pnand %p462_p6, %p113_p7  ;;  %s608_s26 = smov [#allocation2]  }
   0xb   : > { %s126_s27 = sshll.u32 %s608_s26, 4  ;;  %s609_s28 = smov 64   ;;  %s127_s27 = int_to_ptr.vmem [resolvable:$true] %s126_s27 }
   0xc   : > { %p514_p10 = pneg %p674_p9  ;;  %s610_s29 = smov 4  }
   0xd   : > { %p464_p12 = scmp.ge.s32.totalorder %s606_s14, 9 }
   0xe   : > { %p515_p11 = pnand %p518_p8, %p514_p10 }
   0xf   : > { %139 = sbr.rel (%p464_p12) target bundleno = 28 (0x1c), region = 24 }
  0x10   : > { %517 = dma.hbm_to_vmem [thread:$0]  (!%p515_p11), %s125_s25, 256, %s127_s27, [#allocation3], %s609_s28, %s609_s28, %s610_s29  }
  0x14   : > { %142 = sbr.rel (!%p663_p4) target bundleno = 28 (0x1c), region = 28  ;;  %s144_s30 = sand.u32 (%p663_p4), 1, %s602_s13  }
  0x15   : > { %s466_s4 = sshll.u32 (%p663_p4), %s606_s14, 2  ;;  %s465_s5 = sshll.u32 (%p663_p4), %s144_s30, 4 }
  0x16   : > { %s148_s8 = scalar_lea.vmem (%p663_p4), %s733_s1, %s466_s4  ;;  %s146_s9 = scalar_lea.vmem (%p663_p4), [#allocation4], %s465_s5 }
  0x17   : > { %v165_v0 = vld [vmem:[%s148_s8] sm:$0xf] (%p663_p4)  ;;  %v167_v1 = vld [vmem:[%s148_s8 + $0x24] sm:$0xf] (%p663_p4)  ;;  %v169_v2 = vld [vmem:[%s148_s8 + $0x48] sm:$0xf] (%p663_p4) }
  0x18   : > { %166 = vst [vmem:[%s146_s9] sm:$0xf] (%p663_p4), %v165_v0  ;;  %v171_v3 = vld [vmem:[%s148_s8 + $0x6c] sm:$0xf] (%p663_p4) }
  0x19   : > { %168 = vst [vmem:[%s146_s9 + $0x4] sm:$0xf] %v167_v1 }
  0x1a   : > { %170 = vst [vmem:[%s146_s9 + $0x8] sm:$0xf] %v169_v2 }
  0x1b   : > { %172 = vst [vmem:[%s146_s9 + $0xc] sm:$0xf] %v171_v3 }
  0x1c PF: > { %207 = sbr.rel (%p674_p9) target bundleno = 197 (0xc5), region = 69 }
  0x21   : > { %593 = dma.done.wait (%p518_p8), [#allocation3], 256  }
  0x22   : > { %595 = vsyncadd (%p518_p8), [#allocation3], 4294967040  ;;  %s215_s10 = sand.u32 1, %s598_s12   ;;  %v611_v4 = vmov 0   ;;  %v248_v6 = vld [vmem:[%s734_s2 + $0x10] sm:$0xff]  ;;  %v246_v7 = vld [vmem:[%s734_s2] sm:$0xff] }
  0x23   : > { %s700_s11 = sshll.u32 %s215_s10, 4  ;;  %549 = vset.pattern.permute.xlu1 %v611_v4  ;;  %548 = vset.pattern.permute.xlu0 %v611_v4  ;;  %v493_v9 = vld [vmem:[#allocation2] sm:$0xff]  ;;  %v494_v10 = vld [vmem:[#allocation2 + $0x8] sm:$0xff]  ;;  %vm292_vm0 = vcmask 261120   ;;  %v249_v11 = vld [vmem:[%s734_s2 + $0x18] sm:$0xff]  ;;  %s490_s27 = sshll.u32 (%p667_p5), %s648_s15, 2 }
  0x24   : > { %s217_s14 = scalar_lea.vmem [#allocation4], %s700_s11  ;;  %262 = vperm.xlu1 %549, %v248_v6   ;;  %252 = vperm.xlu0 %548, %v246_v7   ;;  %v247_v12 = vld [vmem:[%s734_s2 + $0x8] sm:$0xff]  ;;  %s236_s26 = scalar_lea.vmem [#allocation5], %s700_s11 }
  0x25   : > { %v496_v5 = vld [vmem:[%s217_s14 + $0x8] sm:$0xff]  ;;  %v495_v8 = vld [vmem:[%s217_s14] sm:$0xff]  ;;  %s338_s30 = scalar_lea.vmem (%p667_p5), %s735_s3, %s490_s27 }
  0x26   : > { %305 = vmatpush.bf16.msra.mxu0 %v496_v5  ;;  %508 = vmatpush.bf16.msra.mxu1 %v496_v5 }
  0x2a   : > { %306 = vmatpush.bf16.msra.mxu0 %v495_v8  ;;  %509 = vmatpush.bf16.msra.mxu1 %v495_v8 }
  0x2c   : > { %267 = vperm.xlu1 %549, %v249_v11   ;;  %257 = vperm.xlu0 %548, %v247_v12  }
  0x2d   : > { %487 = vmatmul.msk.bf16.vlgmr.msra.gmra.mxu0 %vm292_vm0, %v493_v9  ;;  %488 = vmatmul.msk.bf16.vlgmr.msra.gmra.mxu1 %vm292_vm0, %v494_v10 }
  0x96   : > { %v263_v13 = vpop.permute.xlu1 %262  ;;  %v253_v14 = vpop.permute.xlu0 %252 }
  0x9e   : > { %v268_v17 = vpop.permute.xlu1 %267  ;;  %v258_v18 = vpop.permute.xlu0 %257 }
  0xaa   : > { %v308_v15 = vpop.f32.mrf.mxu0  ;;  %v313_v16 = vpop.f32.mrf.mxu1 }
  0xab   : > { %v309_v19 = vadd.f32 %v308_v15, %v253_v14  ;;  %v314_v20 = vadd.f32 %v313_v16, %v263_v13 }
  0xad   : > { %v318_v25 = vmax.f32 %v309_v19, 0.0  ;;  %v320_v26 = vmax.f32 %v314_v20, 0.0 }
  0xb2   : > { %v310_v21 = vpop.f32.mrf.mxu0  ;;  %v315_v22 = vpop.f32.mrf.mxu1 }
  0xb3   : > { %v311_v23 = vadd.f32 %v310_v21, %v258_v18  ;;  %v316_v24 = vadd.f32 %v315_v22, %v268_v17 }
  0xb5   : > { %v319_v27 = vmax.f32 %v311_v23, 0.0  ;;  %v321_v28 = vmax.f32 %v316_v24, 0.0 }
  0xb6   : > { %336 = sbr.rel (!%p667_p5) target bundleno = 197 (0xc5), region = 81 }
  0xb7   : > { %v500_v29 = vpack.c.bf16 %v319_v27, %v318_v25  ;;  %v505_v30 = vpack.c.bf16 %v321_v28, %v320_v26 }
  0xb9   : > { %501 = vst [vmem:[%s236_s26] sm:$0xff] %v500_v29  }
  0xba   : > { %507 = vst [vmem:[%s236_s26 + $0x8] sm:$0xff] %v505_v30  }
  0xc0   : > { %v355_v31 = vld [vmem:[%s236_s26] sm:$0xf]  ;;  %v357_v32 = vld [vmem:[%s236_s26 + $0x4] sm:$0xf] }
  0xc1   : > { %v359_v33 = vld [vmem:[%s236_s26 + $0x8] sm:$0xf]  ;;  %356 = vst [vmem:[%s338_s30] sm:$0xf] %v355_v31  ;;  %v361_v34 = vld [vmem:[%s236_s26 + $0xc] sm:$0xf] }
  0xc2   : > { %358 = vst [vmem:[%s338_s30 + $0x24] sm:$0xf] %v357_v32 }
  0xc3   : > { %360 = vst [vmem:[%s338_s30 + $0x48] sm:$0xf] %v359_v33 }
  0xc4   : > { %362 = vst [vmem:[%s338_s30 + $0x6c] sm:$0xf] %v361_v34 }
  0xc5 PF: > { %p11_p13 = scmp.ge.s32.totalorder %s651_s16, 11   ;;  %s739_s12 = smov %s602_s13 }
  0xc6   : > { %s740_s13 = smov %s661_s19  ;;  %s741_s14 = smov %s651_s16 }
  0xc7   :  { %13 = sbr.rel (!%p11_p13) target bundleno = 2 (0x2), region = 154 }
  0xcc   :  { %404 = vsyncpa [#allocation3], 1 }
  0xcd   :  { %406 = vsyncpa [#allocation3 + $0x1], 1 }

// kernel: primer_cnn_forward.5
= control target key start
LH: loop header
LB: loop body
LE: loop exit
PB: predicated region body
PF: predicated region fallthrough
CT: control target
= control target key end

     0   :  { %s1811_s12 = smov 0   ;;  %s1813_s13 = smov 0   ;;  %s2227_s0 = inlined_call_operand.vmem [shape: bf16[32,800], index: 0, kind: input, shape index: {}]   ;;  %s2228_s1 = inlined_call_operand.vmem [shape: bf16[800,896], index: 1, kind: input, shape index: {}]   ;;  %s2229_s2 = inlined_call_operand.vmem [shape: f32[32,1], index: 2, kind: input, shape index: {}]   ;;  %s2230_s3 = inlined_call_operand.vmem [shape: bf16[32,896], index: 3, kind: output, shape index: {}]  }
   0x1   :  { %s1815_s14 = smov 0  }
   0x2 LB: > { %s1385_s15 = sadd.s32 4294967295, %s1788_s14   ;;  %s1828_s16 = sadd.s32 1, %s1788_s14   ;;  %s1788_s14 = sphi %s1815_s14, %s2234_s14   ;;  %s1784_s13 = sphi %s1813_s13, %s2233_s13   ;;  %s1780_s12 = sphi %s1811_s12, %s2232_s12  }
   0x3   : > { %s38_s17 = ssub.s32 %s1788_s14, %s1828_s16  ;;  %s41_s18 = sadd.s32 1, %s1784_s13 }
   0x4   : > { %p39_p0 = scmp.eq.s32.totalorder %s38_s17, 0  ;;  %p48_p1 = scmp.ne.s32.totalorder %s1784_s13, %s1780_s12 }
   0x5   : > { %p49_p2 = scmp.eq.s32.totalorder %s1788_s14, 0  ;;  %p99_p3 = scmp.eq.s32.totalorder %s1385_s15, 6 }
   0x6   : > { %s1839_s19 = scalar_select %p39_p0, %s1784_s13, %s41_s18  }
   0x7   : > { %p50_p4 = por %p49_p2, %p48_p1  ;;  %p1841_p5 = por %p99_p3, %p48_p1 }
   0x8   : > { %p1388_p6 = scmp.ge.s32.totalorder %s1788_s14, 7 }
   0xa   : > { %127 = sbr.rel (%p1388_p6) target bundleno = 120 (0x78), region = 24 }
   0xf   : > { %130 = sbr.rel (!%p50_p4) target bundleno = 120 (0x78), region = 28  ;;  %s132_s21 = sand.u32 (%p50_p4), 1, %s1784_s13  }
  0x10   : > { %s1389_s22 = sshll.u32 (%p50_p4), %s1788_s14, 2  ;;  %s1737_s23 = smul.u32 (%p50_p4), 400, %s132_s21 }
  0x11   : > { %s1851_s26 = scalar_lea.vmem (%p50_p4), %s2228_s1, %s1389_s22 }
  0x12   : > { %v153_v0 = vld [vmem:[%s1851_s26] sm:$0xf] (%p50_p4)  ;;  %v155_v1 = vld [vmem:[%s1851_s26 + $0x1c] sm:$0xf] (%p50_p4)  ;;  %v157_v2 = vld [vmem:[%s1851_s26 + $0x38] sm:$0xf] (%p50_p4) }
  0x13   : > { %s1856_s27 = scalar_lea.vmem (%p50_p4), [#allocation2], %s1737_s23  ;;  %v159_v3 = vld [vmem:[%s1851_s26 + $0x54] sm:$0xf] (%p50_p4)  ;;  %v161_v4 = vld [vmem:[%s1851_s26 + $0x70] sm:$0xf] (%p50_p4) }
  0x14   : > { %154 = vst [vmem:[%s1856_s27] sm:$0xf] %v153_v0  ;;  %v163_v5 = vld [vmem:[%s1851_s26 + $0x8c] sm:$0xf]  ;;  %v165_v6 = vld [vmem:[%s1851_s26 + $0xa8] sm:$0xf] }
  0x15   : > { %156 = vst [vmem:[%s1856_s27 + $0x4] sm:$0xf] %v155_v1  ;;  %v167_v7 = vld [vmem:[%s1851_s26 + $0xc4] sm:$0xf]  ;;  %v169_v8 = vld [vmem:[%s1851_s26 + $0xe0] sm:$0xf] }
  0x16   : > { %158 = vst [vmem:[%s1856_s27 + $0x8] sm:$0xf] %v157_v2  ;;  %v171_v9 = vld [vmem:[%s1851_s26 + $0xfc] sm:$0xf]  ;;  %v173_v10 = vld [vmem:[%s1851_s26 + $0x118] sm:$0xf] }
  0x17   : > { %160 = vst [vmem:[%s1856_s27 + $0xc] sm:$0xf] %v159_v3  ;;  %v175_v11 = vld [vmem:[%s1851_s26 + $0x134] sm:$0xf]  ;;  %v177_v12 = vld [vmem:[%s1851_s26 + $0x150] sm:$0xf] }
  0x18   : > { %162 = vst [vmem:[%s1856_s27 + $0x10] sm:$0xf] %v161_v4  ;;  %v179_v13 = vld [vmem:[%s1851_s26 + $0x16c] sm:$0xf]  ;;  %v181_v14 = vld [vmem:[%s1851_s26 + $0x188] sm:$0xf] }
  0x19   : > { %164 = vst [vmem:[%s1856_s27 + $0x14] sm:$0xf] %v163_v5  ;;  %v183_v15 = vld [vmem:[%s1851_s26 + $0x1a4] sm:$0xf]  ;;  %v185_v16 = vld [vmem:[%s1851_s26 + $0x1c0] sm:$0xf] }
  0x1a   : > { %166 = vst [vmem:[%s1856_s27 + $0x18] sm:$0xf] %v165_v6  ;;  %v187_v17 = vld [vmem:[%s1851_s26 + $0x1dc] sm:$0xf]  ;;  %v189_v18 = vld [vmem:[%s1851_s26 + $0x1f8] sm:$0xf] }
  0x1b   : > { %168 = vst [vmem:[%s1856_s27 + $0x1c] sm:$0xf] %v167_v7  ;;  %v191_v19 = vld [vmem:[%s1851_s26 + $0x214] sm:$0xf]  ;;  %v193_v20 = vld [vmem:[%s1851_s26 + $0x230] sm:$0xf] }
  0x1c   : > { %170 = vst [vmem:[%s1856_s27 + $0x20] sm:$0xf] %v169_v8  ;;  %v195_v21 = vld [vmem:[%s1851_s26 + $0x24c] sm:$0xf]  ;;  %v197_v22 = vld [vmem:[%s1851_s26 + $0x268] sm:$0xf] }
  0x1d   : > { %172 = vst [vmem:[%s1856_s27 + $0x24] sm:$0xf] %v171_v9  ;;  %v199_v23 = vld [vmem:[%s1851_s26 + $0x284] sm:$0xf]  ;;  %v201_v24 = vld [vmem:[%s1851_s26 + $0x2a0] sm:$0xf] }
  0x1e   : > { %174 = vst [vmem:[%s1856_s27 + $0x28] sm:$0xf] %v173_v10  ;;  %v203_v25 = vld [vmem:[%s1851_s26 + $0x2bc] sm:$0xf]  ;;  %v205_v26 = vld [vmem:[%s1851_s26 + $0x2d8] sm:$0xf] }
  0x1f   : > { %176 = vst [vmem:[%s1856_s27 + $0x2c] sm:$0xf] %v175_v11  ;;  %v207_v27 = vld [vmem:[%s1851_s26 + $0x2f4] sm:$0xf]  ;;  %v209_v28 = vld [vmem:[%s1851_s26 + $0x310] sm:$0xf] }
  0x20   : > { %178 = vst [vmem:[%s1856_s27 + $0x30] sm:$0xf] %v177_v12  ;;  %v211_v29 = vld [vmem:[%s1851_s26 + $0x32c] sm:$0xf]  ;;  %v213_v30 = vld [vmem:[%s1851_s26 + $0x348] sm:$0xf] }
  0x21   : > { %180 = vst [vmem:[%s1856_s27 + $0x34] sm:$0xf] %v179_v13  ;;  %v215_v31 = vld [vmem:[%s1851_s26 + $0x364] sm:$0xf]  ;;  %v217_v32 = vld [vmem:[%s1851_s26 + $0x380] sm:$0xf] }
  0x22   : > { %182 = vst [vmem:[%s1856_s27 + $0x38] sm:$0xf] %v181_v14  ;;  %v219_v33 = vld [vmem:[%s1851_s26 + $0x39c] sm:$0xf]  ;;  %v221_v34 = vld [vmem:[%s1851_s26 + $0x3b8] sm:$0xf] }
  0x23   : > { %184 = vst [vmem:[%s1856_s27 + $0x3c] sm:$0xf] %v183_v15  ;;  %v223_v35 = vld [vmem:[%s1851_s26 + $0x3d4] sm:$0xf]  ;;  %v225_v36 = vld [vmem:[%s1851_s26 + $0x3f0] sm:$0xf] }
  0x24   : > { %186 = vst [vmem:[%s1856_s27 + $0x40] sm:$0xf] %v185_v16  ;;  %v227_v37 = vld [vmem:[%s1851_s26 + $0x40c] sm:$0xf]  ;;  %v229_v38 = vld [vmem:[%s1851_s26 + $0x428] sm:$0xf] }
  0x25   : > { %188 = vst [vmem:[%s1856_s27 + $0x44] sm:$0xf] %v187_v17  ;;  %v231_v39 = vld [vmem:[%s1851_s26 + $0x444] sm:$0xf]  ;;  %v233_v40 = vld [vmem:[%s1851_s26 + $0x460] sm:$0xf] }
  0x26   : > { %190 = vst [vmem:[%s1856_s27 + $0x48] sm:$0xf] %v189_v18  ;;  %v235_v41 = vld [vmem:[%s1851_s26 + $0x47c] sm:$0xf]  ;;  %v237_v42 = vld [vmem:[%s1851_s26 + $0x498] sm:$0xf] }
  0x27   : > { %192 = vst [vmem:[%s1856_s27 + $0x4c] sm:$0xf] %v191_v19  ;;  %v239_v43 = vld [vmem:[%s1851_s26 + $0x4b4] sm:$0xf]  ;;  %v241_v44 = vld [vmem:[%s1851_s26 + $0x4d0] sm:$0xf] }
  0x28   : > { %194 = vst [vmem:[%s1856_s27 + $0x50] sm:$0xf] %v193_v20  ;;  %v243_v45 = vld [vmem:[%s1851_s26 + $0x4ec] sm:$0xf]  ;;  %v245_v46 = vld [vmem:[%s1851_s26 + $0x508] sm:$0xf] }
  0x29   : > { %196 = vst [vmem:[%s1856_s27 + $0x54] sm:$0xf] %v195_v21  ;;  %v247_v47 = vld [vmem:[%s1851_s26 + $0x524] sm:$0xf]  ;;  %v249_v48 = vld [vmem:[%s1851_s26 + $0x540] sm:$0xf] }
  0x2a   : > { %198 = vst [vmem:[%s1856_s27 + $0x58] sm:$0xf] %v197_v22  ;;  %v251_v49 = vld [vmem:[%s1851_s26 + $0x55c] sm:$0xf]  ;;  %v253_v50 = vld [vmem:[%s1851_s26 + $0x578] sm:$0xf] }
  0x2b   : > { %200 = vst [vmem:[%s1856_s27 + $0x5c] sm:$0xf] %v199_v23  ;;  %v255_v51 = vld [vmem:[%s1851_s26 + $0x594] sm:$0xf]  ;;  %v257_v52 = vld [vmem:[%s1851_s26 + $0x5b0] sm:$0xf] }
  0x2c   : > { %202 = vst [vmem:[%s1856_s27 + $0x60] sm:$0xf] %v201_v24  ;;  %v259_v53 = vld [vmem:[%s1851_s26 + $0x5cc] sm:$0xf]  ;;  %v261_v54 = vld [vmem:[%s1851_s26 + $0x5e8] sm:$0xf] }
  0x2d   : > { %204 = vst [vmem:[%s1856_s27 + $0x64] sm:$0xf] %v203_v25  ;;  %v263_v55 = vld [vmem:[%s1851_s26 + $0x604] sm:$0xf]  ;;  %v265_v56 = vld [vmem:[%s1851_s26 + $0x620] sm:$0xf] }
  0x2e   : > { %206 = vst [vmem:[%s1856_s27 + $0x68] sm:$0xf] %v205_v26  ;;  %v267_v57 = vld [vmem:[%s1851_s26 + $0x63c] sm:$0xf]  ;;  %v269_v58 = vld [vmem:[%s1851_s26 + $0x658] sm:$0xf] }
  0x2f   : > { %208 = vst [vmem:[%s1856_s27 + $0x6c] sm:$0xf] %v207_v27  ;;  %v271_v59 = vld [vmem:[%s1851_s26 + $0x674] sm:$0xf]  ;;  %v273_v60 = vld [vmem:[%s1851_s26 + $0x690] sm:$0xf] }
  0x30   : > { %210 = vst [vmem:[%s1856_s27 + $0x70] sm:$0xf] %v209_v28  ;;  %v275_v61 = vld [vmem:[%s1851_s26 + $0x6ac] sm:$0xf]  ;;  %v277_v62 = vld [vmem:[%s1851_s26 + $0x6c8] sm:$0xf] }
  0x31   : > { %212 = vst [vmem:[%s1856_s27 + $0x74] sm:$0xf] %v211_v29  ;;  %v279_v63 = vld [vmem:[%s1851_s26 + $0x6e4] sm:$0xf]  ;;  %v281_v0 = vld [vmem:[%s1851_s26 + $0x700] sm:$0xf] }
  0x32   : > { %214 = vst [vmem:[%s1856_s27 + $0x78] sm:$0xf] %v213_v30  ;;  %v283_v1 = vld [vmem:[%s1851_s26 + $0x71c] sm:$0xf]  ;;  %v285_v2 = vld [vmem:[%s1851_s26 + $0x738] sm:$0xf] }
  0x33   : > { %216 = vst [vmem:[%s1856_s27 + $0x7c] sm:$0xf] %v215_v31  ;;  %v287_v3 = vld [vmem:[%s1851_s26 + $0x754] sm:$0xf]  ;;  %v289_v4 = vld [vmem:[%s1851_s26 + $0x770] sm:$0xf] }
  0x34   : > { %218 = vst [vmem:[%s1856_s27 + $0x80] sm:$0xf] %v217_v32  ;;  %v291_v5 = vld [vmem:[%s1851_s26 + $0x78c] sm:$0xf]  ;;  %v293_v6 = vld [vmem:[%s1851_s26 + $0x7a8] sm:$0xf] }
  0x35   : > { %220 = vst [vmem:[%s1856_s27 + $0x84] sm:$0xf] %v219_v33  ;;  %v295_v7 = vld [vmem:[%s1851_s26 + $0x7c4] sm:$0xf]  ;;  %v297_v8 = vld [vmem:[%s1851_s26 + $0x7e0] sm:$0xf] }
  0x36   : > { %222 = vst [vmem:[%s1856_s27 + $0x88] sm:$0xf] %v221_v34  ;;  %v299_v9 = vld [vmem:[%s1851_s26 + $0x7fc] sm:$0xf]  ;;  %v301_v10 = vld [vmem:[%s1851_s26 + $0x818] sm:$0xf] }
  0x37   : > { %224 = vst [vmem:[%s1856_s27 + $0x8c] sm:$0xf] %v223_v35  ;;  %v303_v11 = vld [vmem:[%s1851_s26 + $0x834] sm:$0xf]  ;;  %v305_v12 = vld [vmem:[%s1851_s26 + $0x850] sm:$0xf] }
  0x38   : > { %226 = vst [vmem:[%s1856_s27 + $0x90] sm:$0xf] %v225_v36  ;;  %v307_v13 = vld [vmem:[%s1851_s26 + $0x86c] sm:$0xf]  ;;  %v309_v14 = vld [vmem:[%s1851_s26 + $0x888] sm:$0xf] }
  0x39   : > { %228 = vst [vmem:[%s1856_s27 + $0x94] sm:$0xf] %v227_v37  ;;  %v311_v15 = vld [vmem:[%s1851_s26 + $0x8a4] sm:$0xf]  ;;  %v313_v16 = vld [vmem:[%s1851_s26 + $0x8c0] sm:$0xf] }
  0x3a   : > { %230 = vst [vmem:[%s1856_s27 + $0x98] sm:$0xf] %v229_v38  ;;  %v315_v17 = vld [vmem:[%s1851_s26 + $0x8dc] sm:$0xf]  ;;  %v317_v18 = vld [vmem:[%s1851_s26 + $0x8f8] sm:$0xf] }
  0x3b   : > { %232 = vst [vmem:[%s1856_s27 + $0x9c] sm:$0xf] %v231_v39  ;;  %v319_v19 = vld [vmem:[%s1851_s26 + $0x914] sm:$0xf]  ;;  %v321_v20 = vld [vmem:[%s1851_s26 + $0x930] sm:$0xf] }
  0x3c   : > { %234 = vst [vmem:[%s1856_s27 + $0xa0] sm:$0xf] %v233_v40  ;;  %v323_v21 = vld [vmem:[%s1851_s26 + $0x94c] sm:$0xf]  ;;  %v325_v22 = vld [vmem:[%s1851_s26 + $0x968] sm:$0xf] }
  0x3d   : > { %236 = vst [vmem:[%s1856_s27 + $0xa4] sm:$0xf] %v235_v41  ;;  %v327_v23 = vld [vmem:[%s1851_s26 + $0x984] sm:$0xf]  ;;  %v329_v24 = vld [vmem:[%s1851_s26 + $0x9a0] sm:$0xf] }
  0x3e   : > { %238 = vst [vmem:[%s1856_s27 + $0xa8] sm:$0xf] %v237_v42  ;;  %v331_v25 = vld [vmem:[%s1851_s26 + $0x9bc] sm:$0xf]  ;;  %v333_v26 = vld [vmem:[%s1851_s26 + $0x9d8] sm:$0xf] }
  0x3f   : > { %240 = vst [vmem:[%s1856_s27 + $0xac] sm:$0xf] %v239_v43  ;;  %v335_v27 = vld [vmem:[%s1851_s26 + $0x9f4] sm:$0xf]  ;;  %v337_v28 = vld [vmem:[%s1851_s26 + $0xa10] sm:$0xf] }
  0x40   : > { %242 = vst [vmem:[%s1856_s27 + $0xb0] sm:$0xf] %v241_v44  ;;  %v339_v29 = vld [vmem:[%s1851_s26 + $0xa2c] sm:$0xf]  ;;  %v341_v30 = vld [vmem:[%s1851_s26 + $0xa48] sm:$0xf] }
  0x41   : > { %244 = vst [vmem:[%s1856_s27 + $0xb4] sm:$0xf] %v243_v45  ;;  %v343_v31 = vld [vmem:[%s1851_s26 + $0xa64] sm:$0xf]  ;;  %v345_v32 = vld [vmem:[%s1851_s26 + $0xa80] sm:$0xf] }
  0x42   : > { %246 = vst [vmem:[%s1856_s27 + $0xb8] sm:$0xf] %v245_v46  ;;  %v347_v33 = vld [vmem:[%s1851_s26 + $0xa9c] sm:$0xf]  ;;  %v349_v34 = vld [vmem:[%s1851_s26 + $0xab8] sm:$0xf] }
  0x43   : > { %248 = vst [vmem:[%s1856_s27 + $0xbc] sm:$0xf] %v247_v47  ;;  %v351_v35 = vld [vmem:[%s1851_s26 + $0xad4] sm:$0xf] }
  0x44   : > { %250 = vst [vmem:[%s1856_s27 + $0xc0] sm:$0xf] %v249_v48 }
  0x45   : > { %252 = vst [vmem:[%s1856_s27 + $0xc4] sm:$0xf] %v251_v49 }
  0x46   : > { %254 = vst [vmem:[%s1856_s27 + $0xc8] sm:$0xf] %v253_v50 }
  0x47   : > { %256 = vst [vmem:[%s1856_s27 + $0xcc] sm:$0xf] %v255_v51 }
  0x48   : > { %258 = vst [vmem:[%s1856_s27 + $0xd0] sm:$0xf] %v257_v52 }
  0x49   : > { %260 = vst [vmem:[%s1856_s27 + $0xd4] sm:$0xf] %v259_v53 }
  0x4a   : > { %262 = vst [vmem:[%s1856_s27 + $0xd8] sm:$0xf] %v261_v54 }
  0x4b   : > { %264 = vst [vmem:[%s1856_s27 + $0xdc] sm:$0xf] %v263_v55 }
  0x4c   : > { %266 = vst [vmem:[%s1856_s27 + $0xe0] sm:$0xf] %v265_v56 }
  0x4d   : > { %268 = vst [vmem:[%s1856_s27 + $0xe4] sm:$0xf] %v267_v57 }
  0x4e   : > { %270 = vst [vmem:[%s1856_s27 + $0xe8] sm:$0xf] %v269_v58 }
  0x4f   : > { %272 = vst [vmem:[%s1856_s27 + $0xec] sm:$0xf] %v271_v59 }
  0x50   : > { %274 = vst [vmem:[%s1856_s27 + $0xf0] sm:$0xf] %v273_v60 }
  0x51   : > { %276 = vst [vmem:[%s1856_s27 + $0xf4] sm:$0xf] %v275_v61 }
  0x52   : > { %278 = vst [vmem:[%s1856_s27 + $0xf8] sm:$0xf] %v277_v62 }
  0x53   : > { %280 = vst [vmem:[%s1856_s27 + $0xfc] sm:$0xf] %v279_v63 }
  0x54   : > { %282 = vst [vmem:[%s1856_s27 + $0x100] sm:$0xf] %v281_v0 }
  0x55   : > { %284 = vst [vmem:[%s1856_s27 + $0x104] sm:$0xf] %v283_v1 }
  0x56   : > { %286 = vst [vmem:[%s1856_s27 + $0x108] sm:$0xf] %v285_v2 }
  0x57   : > { %288 = vst [vmem:[%s1856_s27 + $0x10c] sm:$0xf] %v287_v3 }
  0x58   : > { %290 = vst [vmem:[%s1856_s27 + $0x110] sm:$0xf] %v289_v4 }
  0x59   : > { %292 = vst [vmem:[%s1856_s27 + $0x114] sm:$0xf] %v291_v5 }
  0x5a   : > { %294 = vst [vmem:[%s1856_s27 + $0x118] sm:$0xf] %v293_v6 }
  0x5b   : > { %296 = vst [vmem:[%s1856_s27 + $0x11c] sm:$0xf] %v295_v7 }
  0x5c   : > { %298 = vst [vmem:[%s1856_s27 + $0x120] sm:$0xf] %v297_v8 }
  0x5d   : > { %300 = vst [vmem:[%s1856_s27 + $0x124] sm:$0xf] %v299_v9 }
  0x5e   : > { %302 = vst [vmem:[%s1856_s27 + $0x128] sm:$0xf] %v301_v10 }
  0x5f   : > { %304 = vst [vmem:[%s1856_s27 + $0x12c] sm:$0xf] %v303_v11 }
  0x60   : > { %306 = vst [vmem:[%s1856_s27 + $0x130] sm:$0xf] %v305_v12 }
  0x61   : > { %308 = vst [vmem:[%s1856_s27 + $0x134] sm:$0xf] %v307_v13 }
  0x62   : > { %310 = vst [vmem:[%s1856_s27 + $0x138] sm:$0xf] %v309_v14 }
  0x63   : > { %312 = vst [vmem:[%s1856_s27 + $0x13c] sm:$0xf] %v311_v15 }
  0x64   : > { %314 = vst [vmem:[%s1856_s27 + $0x140] sm:$0xf] %v313_v16 }
  0x65   : > { %316 = vst [vmem:[%s1856_s27 + $0x144] sm:$0xf] %v315_v17 }
  0x66   : > { %318 = vst [vmem:[%s1856_s27 + $0x148] sm:$0xf] %v317_v18 }
  0x67   : > { %320 = vst [vmem:[%s1856_s27 + $0x14c] sm:$0xf] %v319_v19 }
  0x68   : > { %322 = vst [vmem:[%s1856_s27 + $0x150] sm:$0xf] %v321_v20 }
  0x69   : > { %324 = vst [vmem:[%s1856_s27 + $0x154] sm:$0xf] %v323_v21 }
  0x6a   : > { %326 = vst [vmem:[%s1856_s27 + $0x158] sm:$0xf] %v325_v22 }
  0x6b   : > { %328 = vst [vmem:[%s1856_s27 + $0x15c] sm:$0xf] %v327_v23 }
  0x6c   : > { %330 = vst [vmem:[%s1856_s27 + $0x160] sm:$0xf] %v329_v24 }
  0x6d   : > { %332 = vst [vmem:[%s1856_s27 + $0x164] sm:$0xf] %v331_v25 }
  0x6e   : > { %334 = vst [vmem:[%s1856_s27 + $0x168] sm:$0xf] %v333_v26 }
  0x6f   : > { %336 = vst [vmem:[%s1856_s27 + $0x16c] sm:$0xf] %v335_v27 }
  0x70   : > { %338 = vst [vmem:[%s1856_s27 + $0x170] sm:$0xf] %v337_v28 }
  0x71   : > { %340 = vst [vmem:[%s1856_s27 + $0x174] sm:$0xf] %v339_v29 }
  0x72   : > { %342 = vst [vmem:[%s1856_s27 + $0x178] sm:$0xf] %v341_v30 }
  0x73   : > { %344 = vst [vmem:[%s1856_s27 + $0x17c] sm:$0xf] %v343_v31 }
  0x74   : > { %346 = vst [vmem:[%s1856_s27 + $0x180] sm:$0xf] %v345_v32 }
  0x75   : > { %348 = vst [vmem:[%s1856_s27 + $0x184] sm:$0xf] %v347_v33 }
  0x76   : > { %350 = vst [vmem:[%s1856_s27 + $0x188] sm:$0xf] %v349_v34 }
  0x77   : > { %352 = vst [vmem:[%s1856_s27 + $0x18c] sm:$0xf] %v351_v35 }
  0x78 PF: > { %p1390_p7 = scmp.ge.s32.totalorder %s1788_s14, 1  ;;  %p575_p8 = scmp.lt.s32.totalorder %s1788_s14, 8 }
  0x7a   : > { %p576_p9 = pnand %p1390_p7, %p575_p8 }
  0x7b   : > { %s582_s28 = sand.u32 (!%p576_p9), 1, %s1780_s12  }
  0x7c   : > { %579 = sbr.rel (%p576_p9) target bundleno = 367 (0x16f), region = 69  ;;  %s1391_s18 = sshll.u32 (!%p576_p9), %s582_s28, 4 }
  0x7d   : > { %s1738_s29 = smul.u32 (!%p576_p9), 400, %s582_s28  ;;  %s603_s21 = scalar_lea.vmem (!%p576_p9), [#allocation3], %s1391_s18 }
  0x7f   : > { %s2060_s30 = scalar_lea.vmem (!%p576_p9), [#allocation2], %s1738_s29 }
  0x81   : > { %v1675_v36 = vld [vmem:[%s2060_s30 + $0x38] sm:$0xff]  ;;  %v1674_v40 = vld [vmem:[%s2060_s30 + $0x30] sm:$0xff]  ;;  %v1673_v44 = vld [vmem:[%s2060_s30 + $0x28] sm:$0xff]  ;;  %v1790_v52 = vmov 0   ;;  %vm1115_vm0 = vcmask 261120   ;;  %s1651_s12 = sshll.u32 (%p1841_p5), %s1385_s15, 2 }
  0x82   : > { %v1683_v37 = vld [vmem:[%s2060_s30 + $0x78] sm:$0xff]  ;;  %1122 = vmatpush.bf16.msra.mxu0 %v1675_v36  ;;  %v1682_v41 = vld [vmem:[%s2060_s30 + $0x70] sm:$0xff]  ;;  %v1681_v45 = vld [vmem:[%s2060_s30 + $0x68] sm:$0xff]  ;;  %1764 = vset.pattern.permute.xlu0 %v1790_v52  ;;  %s1275_s23 = scalar_lea.vmem (%p1841_p5), %s2230_s3, %s1651_s12 }
  0x83   : > { %v1691_v38 = vld [vmem:[%s2060_s30 + $0xb8] sm:$0xff]  ;;  %1141 = vmatpush.bf16.msra.mxu1 %v1683_v37  ;;  %v1690_v42 = vld [vmem:[%s2060_s30 + $0xb0] sm:$0xff]  ;;  %v1689_v46 = vld [vmem:[%s2060_s30 + $0xa8] sm:$0xff]  ;;  %1765 = vset.pattern.permute.xlu1 %v1790_v52 }
  0x84   : > { %v1699_v39 = vld [vmem:[%s2060_s30 + $0xf8] sm:$0xff]  ;;  %1160 = vmatpush.bf16.msra.mxu2 %v1691_v38  ;;  %v1698_v43 = vld [vmem:[%s2060_s30 + $0xf0] sm:$0xff]  ;;  %v1697_v47 = vld [vmem:[%s2060_s30 + $0xe8] sm:$0xff] }
  0x85   : > { %1179 = vmatpush.bf16.msra.mxu3 %v1699_v39  ;;  %v1672_v48 = vld [vmem:[%s2060_s30 + $0x20] sm:$0xff]  ;;  %v1671_v53 = vld [vmem:[%s2060_s30 + $0x18] sm:$0xff]  ;;  %v1670_v58 = vld [vmem:[%s2060_s30 + $0x10] sm:$0xff] }
  0x86   : > { %1123 = vmatpush.bf16.msra.mxu0 %v1674_v40  ;;  %v1680_v49 = vld [vmem:[%s2060_s30 + $0x60] sm:$0xff]  ;;  %v1679_v54 = vld [vmem:[%s2060_s30 + $0x58] sm:$0xff]  ;;  %v1678_v59 = vld [vmem:[%s2060_s30 + $0x50] sm:$0xff] }
  0x87   : > { %1142 = vmatpush.bf16.msra.mxu1 %v1682_v41  ;;  %v1688_v50 = vld [vmem:[%s2060_s30 + $0xa0] sm:$0xff]  ;;  %v1687_v55 = vld [vmem:[%s2060_s30 + $0x98] sm:$0xff]  ;;  %v1686_v60 = vld [vmem:[%s2060_s30 + $0x90] sm:$0xff] }
  0x88   : > { %1161 = vmatpush.bf16.msra.mxu2 %v1690_v42  ;;  %v1696_v51 = vld [vmem:[%s2060_s30 + $0xe0] sm:$0xff]  ;;  %v1695_v56 = vld [vmem:[%s2060_s30 + $0xd8] sm:$0xff]  ;;  %v1694_v61 = vld [vmem:[%s2060_s30 + $0xd0] sm:$0xff] }
  0x89   : > { %1180 = vmatpush.bf16.msra.mxu3 %v1698_v43  ;;  %v721_v57 = vld [vmem:[%s2229_s2] sm:$0xff]  ;;  %v722_v62 = vld [vmem:[%s2229_s2 + $0x8] sm:$0xff]  ;;  %v1657_v6 = vld [vmem:[%s2227_s0 + $0x18] sm:$0xf0] }
  0x8a   : > { %1124 = vmatpush.bf16.msra.mxu0 %v1673_v44  ;;  %727 = vperm.xlu0 %1764, %v721_v57   ;;  %v1669_v63 = vld [vmem:[%s2060_s30 + $0x8] sm:$0xff]  ;;  %v1668_v3 = vld [vmem:[%s2060_s30] sm:$0xff]  ;;  %v1707_v17 = vld [vmem:[%s2060_s30 + $0x138] sm:$0xff] }
  0x8b   : > { %1143 = vmatpush.bf16.msra.mxu1 %v1681_v45  ;;  %v1677_v0 = vld [vmem:[%s2060_s30 + $0x48] sm:$0xff]  ;;  %v1676_v4 = vld [vmem:[%s2060_s30 + $0x40] sm:$0xff]  ;;  %v1715_v22 = vld [vmem:[%s2060_s30 + $0x178] sm:$0xff] }
  0x8c   : > { %1162 = vmatpush.bf16.msra.mxu2 %v1689_v46  ;;  %v1685_v1 = vld [vmem:[%s2060_s30 + $0x88] sm:$0xff]  ;;  %v1394_v5 = vld [vmem:[%s2227_s0] sm:$0xf]  ;;  %v1654_v9 = vld [vmem:[%s2227_s0 + $0x4] sm:$0xf] }
  0x8d   : > { %1181 = vmatpush.bf16.msra.mxu3 %v1697_v47  ;;  %v1693_v2 = vld [vmem:[%s2060_s30 + $0xc8] sm:$0xff]  ;;  %v1684_v7 = vld [vmem:[%s2060_s30 + $0x80] sm:$0xff]  ;;  %v1395_v18 = vor.u32 %v1657_v6, %v1394_v5  ;;  %v1706_v23 = vld [vmem:[%s2060_s30 + $0x130] sm:$0xff] }
  0x8e   : > { %1125 = vmatpush.bf16.msra.mxu0 %v1672_v48  ;;  %v1692_v8 = vld [vmem:[%s2060_s30 + $0xc0] sm:$0xff]  ;;  %v1402_v11 = vld [vmem:[%s2227_s0 + $0x8] sm:$0xf]  ;;  %v1655_v13 = vld [vmem:[%s2227_s0 + $0xc] sm:$0xf] }
  0x8f   : > { %1144 = vmatpush.bf16.msra.mxu1 %v1680_v49  ;;  %v1396_v10 = vld [vmem:[%s2227_s0 + $0x1c] sm:$0xf0]  ;;  %v1658_v12 = vld [vmem:[%s2227_s0 + $0x20] sm:$0xf0]  ;;  %v1404_v14 = vld [vmem:[%s2227_s0 + $0x24] sm:$0xf0] }
  0x90   : > { %1163 = vmatpush.bf16.msra.mxu2 %v1688_v50  ;;  %v723_v15 = vld [vmem:[%s2229_s2 + $0x10] sm:$0xff]  ;;  %v1717_v16 = vld [vmem:[%s2060_s30 + $0x188] sm:$0xff]  ;;  %v1399_v19 = vor.u32 %v1654_v9, %v1396_v10  ;;  %v1403_v20 = vor.u32 %v1658_v12, %v1402_v11  ;;  %v1407_v21 = vor.u32 %v1655_v13, %v1404_v14  ;;  %v1430_v35 = vld [vmem:[%s2227_s0 + $0x40] sm:$0xf] }
  0x91   : > { %1182 = vmatpush.bf16.msra.mxu3 %v1696_v51  ;;  %737 = vperm.xlu1 %1765, %v723_v15   ;;  %v1716_v24 = vld [vmem:[%s2060_s30 + $0x180] sm:$0xff]  ;;  %v1714_v25 = vld [vmem:[%s2060_s30 + $0x170] sm:$0xff]  ;;  %v724_v26 = vld [vmem:[%s2229_s2 + $0x18] sm:$0xff] }
  0x92   : > { %1126 = vmatpush.bf16.msra.mxu0 %v1671_v53  ;;  %732 = vperm.xlu0 %1764, %v722_v62   ;;  %v1705_v27 = vld [vmem:[%s2060_s30 + $0x128] sm:$0xff]  ;;  %v1704_v29 = vld [vmem:[%s2060_s30 + $0x120] sm:$0xff]  ;;  %v1703_v39 = vld [vmem:[%s2060_s30 + $0x118] sm:$0xff] }
  0x93   : > { %1145 = vmatpush.bf16.msra.mxu1 %v1679_v54  ;;  %v1713_v28 = vld [vmem:[%s2060_s30 + $0x168] sm:$0xff]  ;;  %v1712_v30 = vld [vmem:[%s2060_s30 + $0x160] sm:$0xff]  ;;  %v1711_v44 = vld [vmem:[%s2060_s30 + $0x158] sm:$0xff] }
  0x94   : > { %1164 = vmatpush.bf16.msra.mxu2 %v1687_v55  ;;  %v1422_v31 = vld [vmem:[%s2227_s0 + $0x38] sm:$0xf]  ;;  %v1664_v32 = vld [vmem:[%s2227_s0 + $0x50] sm:$0xf0]  ;;  %v1661_v33 = vld [vmem:[%s2227_s0 + $0x3c] sm:$0xf] }
  0x95   : > { %1183 = vmatpush.bf16.msra.mxu3 %v1695_v56  ;;  %v1424_v34 = vld [vmem:[%s2227_s0 + $0x54] sm:$0xf0]  ;;  %v1665_v36 = vld [vmem:[%s2227_s0 + $0x58] sm:$0xf0]  ;;  %v1662_v37 = vld [vmem:[%s2227_s0 + $0x44] sm:$0xf]  ;;  %v1423_v40 = vor.u32 %v1664_v32, %v1422_v31 }
  0x96   : > { %1127 = vmatpush.bf16.msra.mxu0 %v1670_v58  ;;  %v1432_v38 = vld [vmem:[%s2227_s0 + $0x5c] sm:$0xf0]  ;;  %v1427_v41 = vor.u32 %v1661_v33, %v1424_v34  ;;  %v1431_v42 = vor.u32 %v1665_v36, %v1430_v35  ;;  %v1701_v47 = vld [vmem:[%s2060_s30 + $0x108] sm:$0xff]  ;;  %v1410_v51 = vld [vmem:[%s2227_s0 + $0x10] sm:$0xf] }
  0x97   : > { %1146 = vmatpush.bf16.msra.mxu1 %v1678_v59  ;;  %v1435_v43 = vor.u32 %v1662_v37, %v1432_v38  ;;  %v1702_v45 = vld [vmem:[%s2060_s30 + $0x110] sm:$0xff]  ;;  %v1709_v48 = vld [vmem:[%s2060_s30 + $0x148] sm:$0xff]  ;;  %v1700_v49 = vld [vmem:[%s2060_s30 + $0x100] sm:$0xff] }
  0x98   : > { %1165 = vmatpush.bf16.msra.mxu2 %v1686_v60  ;;  %v1710_v46 = vld [vmem:[%s2060_s30 + $0x150] sm:$0xff]  ;;  %v1708_v50 = vld [vmem:[%s2060_s30 + $0x140] sm:$0xff]  ;;  %v1659_v52 = vld [vmem:[%s2227_s0 + $0x28] sm:$0xf0] }
  0x99   : > { %1184 = vmatpush.bf16.msra.mxu3 %v1694_v61  ;;  %742 = vperm.xlu1 %1765, %v724_v26   ;;  %v1438_v53 = vld [vmem:[%s2227_s0 + $0x48] sm:$0xf]  ;;  %v1666_v54 = vld [vmem:[%s2227_s0 + $0x60] sm:$0xf0]  ;;  %v1656_v55 = vld [vmem:[%s2227_s0 + $0x14] sm:$0xf]  ;;  %v1411_v59 = vor.u32 %v1659_v52, %v1410_v51 }
  0x9a   : > { %1128 = vmatpush.bf16.msra.mxu0 %v1669_v63  ;;  %v1412_v56 = vld [vmem:[%s2227_s0 + $0x2c] sm:$0xf0]  ;;  %v1418_v57 = vld [vmem:[%s2227_s0 + $0x18] sm:$0xf]  ;;  %v1660_v58 = vld [vmem:[%s2227_s0 + $0x30] sm:$0xf0]  ;;  %v1439_v60 = vor.u32 %v1666_v54, %v1438_v53 }
  0x9b   : > { %1147 = vmatpush.bf16.msra.mxu1 %v1677_v0  ;;  %v1415_v61 = vor.u32 %v1656_v55, %v1412_v56  ;;  %v1419_v62 = vor.u32 %v1660_v58, %v1418_v57  ;;  %v1663_v63 = vld [vmem:[%s2227_s0 + $0x4c] sm:$0xf]  ;;  %v1440_v0 = vld [vmem:[%s2227_s0 + $0x64] sm:$0xf0] }
  0x9c   : > { %1166 = vmatpush.bf16.msra.mxu2 %v1685_v1  ;;  %v1446_v1 = vld [vmem:[%s2227_s0 + $0x50] sm:$0xf] }
  0x9d   : > { %1185 = vmatpush.bf16.msra.mxu3 %v1693_v2  ;;  %v1667_v2 = vld [vmem:[%s2227_s0 + $0x68] sm:$0xf0] }
  0x9e   : > { %1129 = vmatpush.bf16.msra.mxu0 %v1668_v3  ;;  %v1443_v3 = vor.u32 %v1663_v63, %v1440_v0 }
  0x9f   : > { %1148 = vmatpush.bf16.msra.mxu1 %v1676_v4  ;;  %v1447_v4 = vor.u32 %v1667_v2, %v1446_v1 }
  0xa0   : > { %1167 = vmatpush.bf16.msra.mxu2 %v1684_v7 }
  0xa1   : > { %1186 = vmatpush.bf16.msra.mxu3 %v1692_v8  ;;  %1130 = vmatmul.bf16.vlgmr.msra.gmra.mxu0 %v1395_v18 }
  0xa2   : > { %1198 = vmatpush.bf16.msrb.mxu0 %v1707_v17  ;;  %1149 = vmatmul.bf16.vlgmr.msra.gmra.mxu1 %v1399_v19 }
  0xa3   : > { %1168 = vmatmul.bf16.vlgmr.msra.gmra.mxu2 %v1403_v20  ;;  %1217 = vmatpush.bf16.msrb.mxu1 %v1715_v22 }
  0xa4   : > { %1242 = vmatpush.bf16.msrb.mxu2 %v1717_v16  ;;  %1187 = vmatmul.bf16.vlgmr.msra.gmra.mxu3 %v1407_v21 }
  0xa5   : > { %1729 = vmatpush.bf16.msrb.mxu3 %v1707_v17 }
  0xa6   : > { %1199 = vmatpush.bf16.msrb.mxu0 %v1706_v23 }
  0xa7   : > { %1218 = vmatpush.bf16.msrb.mxu1 %v1714_v25 }
  0xa8   : > { %1243 = vmatpush.bf16.msrb.mxu2 %v1716_v24 }
  0xa9   : > { %1730 = vmatpush.bf16.msrb.mxu3 %v1706_v23 }
  0xaa   : > { %1200 = vmatpush.bf16.msrb.mxu0 %v1705_v27 }
  0xab   : > { %1219 = vmatpush.bf16.msrb.mxu1 %v1713_v28 }
  0xad   : > { %1731 = vmatpush.bf16.msrb.mxu3 %v1705_v27 }
  0xae   : > { %1201 = vmatpush.bf16.msrb.mxu0 %v1704_v29 }
  0xaf   : > { %1220 = vmatpush.bf16.msrb.mxu1 %v1712_v30 }
  0xb1   : > { %1732 = vmatpush.bf16.msrb.mxu3 %v1704_v29  ;;  %1135 = vmatmul.bf16.gmra.mxu0 %v1423_v40 }
  0xb2   : > { %1202 = vmatpush.bf16.msrb.mxu0 %v1703_v39  ;;  %1154 = vmatmul.bf16.gmra.mxu1 %v1427_v41 }
  0xb3   : > { %1173 = vmatmul.bf16.gmra.mxu2 %v1431_v42  ;;  %1221 = vmatpush.bf16.msrb.mxu1 %v1711_v44 }
  0xb4   : > { %1192 = vmatmul.bf16.gmra.mxu3 %v1435_v43 }
  0xb5   : > { %1733 = vmatpush.bf16.msrb.mxu3 %v1703_v39 }
  0xb6   : > { %1203 = vmatpush.bf16.msrb.mxu0 %v1702_v45 }
  0xb7   : > { %1222 = vmatpush.bf16.msrb.mxu1 %v1710_v46 }
  0xb9   : > { %1734 = vmatpush.bf16.msrb.mxu3 %v1702_v45 }
  0xba   : > { %1204 = vmatpush.bf16.msrb.mxu0 %v1701_v47 }
  0xbb   : > { %1223 = vmatpush.bf16.msrb.mxu1 %v1709_v48 }
  0xbd   : > { %1735 = vmatpush.bf16.msrb.mxu3 %v1701_v47 }
  0xbe   : > { %1205 = vmatpush.bf16.msrb.mxu0 %v1700_v49 }
  0xbf   : > { %1224 = vmatpush.bf16.msrb.mxu1 %v1708_v50 }
  0xc1   : > { %1736 = vmatpush.bf16.msrb.mxu3 %v1700_v49  ;;  %1206 = vmatmul.bf16.vlgmr.msrb.gmra.mxu0 %v1411_v59 }
  0xc2   : > { %1225 = vmatmul.bf16.vlgmr.msrb.gmra.mxu1 %v1415_v61 }
  0xc3   : > { %1648 = vmatmul.msk.bf16.vlgmr.msrb.gmra.mxu2 %vm1115_vm0, %v1419_v62 }
  0xc4   : > { %1211 = vmatmul.bf16.vlgmr.msrb.gmra.mxu3 %v1439_v60 }
  0xd2   : > { %1230 = vmatmul.bf16.gmra.mxu1 %v1443_v3 }
  0xd3   : > { %1649 = vmatmul.msk.bf16.gmra.mxu2 %vm1115_vm0, %v1447_v4 }
  0xfc   : > { %v728_v14 = vpop.permute.xlu0 %727 }
 0x103   : > { %v738_v29 = vpop.permute.xlu1 %737 }
 0x104   : > { %v733_v20 = vpop.permute.xlu0 %732 }
 0x10b   : > { %v743_v41 = vpop.permute.xlu1 %742 }
 0x11e   : > { %v1131_v5 = vpop.f32.mrf.mxu0 }
 0x11f   : > { %v1150_v6 = vpop.f32.mrf.mxu1  ;;  %v1132_v19 = vadd.f32 %v1131_v5, %v728_v14 }
 0x121   : > { %v1151_v22 = vadd.f32 %v1150_v6, %v1132_v19 }
 0x126   : > { %v1169_v7 = vpop.f32.mrf.mxu2  ;;  %v1133_v9 = vpop.f32.mrf.mxu0 }
 0x127   : > { %v1188_v8 = vpop.f32.mrf.mxu3  ;;  %v1152_v10 = vpop.f32.mrf.mxu1  ;;  %v1134_v23 = vadd.f32 %v1133_v9, %v733_v20  ;;  %v1170_v27 = vadd.f32 %v1169_v7, %v1151_v22 }
 0x129   : > { %v1153_v28 = vadd.f32 %v1152_v10, %v1134_v23  ;;  %v1189_v32 = vadd.f32 %v1188_v8, %v1170_v27 }
 0x12e   : > { %v1171_v11 = vpop.f32.mrf.mxu2  ;;  %v1136_v12 = vpop.f32.mrf.mxu0 }
 0x12f   : > { %v1155_v13 = vpop.f32.mrf.mxu1  ;;  %v1190_v15 = vpop.f32.mrf.mxu3  ;;  %v1172_v30 = vadd.f32 %v1171_v11, %v1153_v28  ;;  %v1137_v39 = vadd.f32 %v1136_v12, %v738_v29 }
 0x131   : > { %v1191_v35 = vadd.f32 %v1190_v15, %v1172_v30  ;;  %v1156_v46 = vadd.f32 %v1155_v13, %v1137_v39 }
 0x136   : > { %v1174_v16 = vpop.f32.mrf.mxu2  ;;  %v1138_v17 = vpop.f32.mrf.mxu0 }
 0x137   : > { %v1157_v18 = vpop.f32.mrf.mxu1  ;;  %v1193_v21 = vpop.f32.mrf.mxu3  ;;  %v1139_v47 = vadd.f32 %v1138_v17, %v743_v41  ;;  %v1175_v52 = vadd.f32 %v1174_v16, %v1156_v46 }
 0x139   : > { %v1158_v53 = vadd.f32 %v1157_v18, %v1139_v47  ;;  %v1194_v57 = vadd.f32 %v1193_v21, %v1175_v52 }
 0x13e   : > { %v1176_v24 = vpop.f32.mrf.mxu2  ;;  %v1207_v25 = vpop.f32.mrf.mxu0 }
 0x13f   : > { %v1226_v26 = vpop.f32.mrf.mxu1  ;;  %v1195_v31 = vpop.f32.mrf.mxu3  ;;  %v1208_v36 = vadd.f32 %v1207_v25, %v1189_v32  ;;  %v1177_v55 = vadd.f32 %v1176_v24, %v1158_v53 }
 0x141   : > { %v1227_v40 = vadd.f32 %v1226_v26, %v1208_v36  ;;  %v1196_v59 = vadd.f32 %v1195_v31, %v1177_v55 }
 0x146   : > { %v1245_v33 = vpop.f32.mrf.mxu2  ;;  %v1209_v34 = vpop.f32.mrf.mxu0 }
 0x147   : > { %v1228_v37 = vpop.f32.mrf.mxu1  ;;  %v1210_v38 = vadd.f32 %v1209_v34, %v1191_v35  ;;  %v1246_v42 = vadd.f32 %v1245_v33, %v1227_v40  ;;  %v1212_v44 = vpop.f32.mrf.mxu3 }
 0x148   : > { %v1213_v60 = vadd.f32 %v1212_v44, %v1194_v57 }
 0x149   : > { %v1229_v43 = vadd.f32 %v1228_v37, %v1210_v38  ;;  %v1255_v50 = vmax.f32 %v1246_v42, 0.0 }
 0x14e   : > { %v1247_v45 = vpop.f32.mrf.mxu2 }
 0x14f   : > { %v1248_v48 = vadd.f32 %v1247_v45, %v1229_v43  ;;  %v1231_v49 = vpop.f32.mrf.mxu1  ;;  %v1214_v58 = vpop.f32.mrf.mxu3 }
 0x150   : > { %v1215_v62 = vadd.f32 %v1214_v58, %v1196_v59  ;;  %v1232_v63 = vadd.f32 %v1231_v49, %v1213_v60 }
 0x151   : > { %v1256_v51 = vmax.f32 %v1248_v48, 0.0 }
 0x153   : > { %v1721_v54 = vpack.c.bf16 %v1256_v51, %v1255_v50 }
 0x155   : > { %1722 = vst [vmem:[%s603_s21] sm:$0xff] %v1721_v54  }
 0x156   : > { %v1250_v56 = vpop.f32.mrf.mxu2 }
 0x157   : > { %v1233_v61 = vpop.f32.mrf.mxu1  ;;  %v1251_v0 = vadd.f32 %v1250_v56, %v1232_v63 }
 0x158   : > { %v1234_v1 = vadd.f32 %v1233_v61, %v1215_v62 }
 0x159   : > { %v1257_v4 = vmax.f32 %v1251_v0, 0.0 }
 0x15c   : > { %v1292_v7 = vld [vmem:[%s603_s21] sm:$0xf] (%p1841_p5)  ;;  %v1294_v8 = vld [vmem:[%s603_s21 + $0x4] sm:$0xf] (%p1841_p5) }
 0x15d   : > { %1293 = vst [vmem:[%s1275_s23] sm:$0xf] (%p1841_p5), %v1292_v7 }
 0x15e   : > { %v1252_v2 = vpop.f32.mrf.mxu2  ;;  %1295 = vst [vmem:[%s1275_s23 + $0x1c] sm:$0xf] (%p1841_p5), %v1294_v8 }
 0x15f   : > { %v1253_v3 = vadd.f32 %v1252_v2, %v1234_v1 }
 0x161   : > { %v1258_v5 = vmax.f32 %v1253_v3, 0.0  ;;  %1273 = sbr.rel (!%p1841_p5) target bundleno = 367 (0x16f), region = 77 }
 0x163   : > { %v1726_v6 = vpack.c.bf16 %v1258_v5, %v1257_v4 }
 0x165   : > { %1728 = vst [vmem:[%s603_s21 + $0x8] sm:$0xff] %v1726_v6  }
 0x16c   : > { %v1296_v9 = vld [vmem:[%s603_s21 + $0x8] sm:$0xf]  ;;  %v1298_v10 = vld [vmem:[%s603_s21 + $0xc] sm:$0xf] }
 0x16d   : > { %1297 = vst [vmem:[%s1275_s23 + $0x38] sm:$0xf] %v1296_v9 }
 0x16e   : > { %1299 = vst [vmem:[%s1275_s23 + $0x54] sm:$0xf] %v1298_v10 }
 0x16f PF: > { %p10_p10 = scmp.ge.s32.totalorder %s1828_s16, 9   ;;  %s2232_s12 = smov %s1784_s13 }
 0x170   : > { %s2233_s13 = smov %s1839_s19  ;;  %s2234_s14 = smov %s1828_s16 }
 0x171   :  { %12 = sbr.rel (!%p10_p10) target bundleno = 2 (0x2), region = 149 }

// kernel: primer_cnn_forward.6
= control target key start
LH: loop header
LB: loop body
LE: loop exit
PB: predicated region body
PF: predicated region fallthrough
CT: control target
= control target key end

     0   :  { %v1318_v12 = vmov 0   ;;  %vm635_vm0 = vcmask 261120   ;;  %s1733_s1 = inlined_call_operand.vmem [shape: bf16[800,128], index: 1, kind: input, shape index: {}]   ;;  %s1734_s2 = inlined_call_operand.vmem [shape: f32[64,1], index: 2, kind: input, shape index: {}]   ;;  %s1735_s0 = inlined_call_operand.vmem [shape: bf16[64,800], index: 0, kind: input, shape index: {}]   ;;  %s1736_s3 = inlined_call_operand.vmem [shape: bf16[64,128], index: 3, kind: output, shape index: {}]  }
   0x1   :  { %v1230_v0 = vld [vmem:[%s1733_s1 + $0x38] sm:$0xff]  ;;  %v1229_v3 = vld [vmem:[%s1733_s1 + $0x30] sm:$0xff]  ;;  %v1228_v6 = vld [vmem:[%s1733_s1 + $0x28] sm:$0xff]  ;;  %1315 = vset.pattern.permute.xlu0 %v1318_v12  ;;  %1316 = vset.pattern.permute.xlu1 %v1318_v12 }
   0x2   :  { %v1238_v1 = vld [vmem:[%s1733_s1 + $0x78] sm:$0xff]  ;;  %648 = vmatpush.bf16.msra.mxu0 %v1230_v0  ;;  %1296 = vmatpush.bf16.msra.mxu3 %v1230_v0  ;;  %v1237_v4 = vld [vmem:[%s1733_s1 + $0x70] sm:$0xff]  ;;  %v1236_v7 = vld [vmem:[%s1733_s1 + $0x68] sm:$0xff] }
   0x3   :  { %v1246_v2 = vld [vmem:[%s1733_s1 + $0xb8] sm:$0xff]  ;;  %677 = vmatpush.bf16.msra.mxu1 %v1238_v1  ;;  %v1245_v5 = vld [vmem:[%s1733_s1 + $0xb0] sm:$0xff]  ;;  %v1244_v8 = vld [vmem:[%s1733_s1 + $0xa8] sm:$0xff]  ;;  %1317 = vset.pattern.permute.xlu2 %v1318_v12 }
   0x4   :  { %706 = vmatpush.bf16.msra.mxu2 %v1246_v2  ;;  %v1227_v9 = vld [vmem:[%s1733_s1 + $0x20] sm:$0xff]  ;;  %v1226_v14 = vld [vmem:[%s1733_s1 + $0x18] sm:$0xff]  ;;  %v1225_v17 = vld [vmem:[%s1733_s1 + $0x10] sm:$0xff] }
   0x5   :  { %v1235_v10 = vld [vmem:[%s1733_s1 + $0x60] sm:$0xff]  ;;  %v1234_v15 = vld [vmem:[%s1733_s1 + $0x58] sm:$0xff]  ;;  %v1233_v18 = vld [vmem:[%s1733_s1 + $0x50] sm:$0xff] }
   0x6   :  { %649 = vmatpush.bf16.msra.mxu0 %v1229_v3  ;;  %1297 = vmatpush.bf16.msra.mxu3 %v1229_v3  ;;  %v1243_v11 = vld [vmem:[%s1733_s1 + $0xa0] sm:$0xff]  ;;  %v1242_v16 = vld [vmem:[%s1733_s1 + $0x98] sm:$0xff]  ;;  %v1241_v19 = vld [vmem:[%s1733_s1 + $0x90] sm:$0xff] }
   0x7   :  { %678 = vmatpush.bf16.msra.mxu1 %v1237_v4  ;;  %v147_v13 = vld [vmem:[%s1734_s2] sm:$0xff]  ;;  %v148_v20 = vld [vmem:[%s1734_s2 + $0x8] sm:$0xff]  ;;  %v149_v25 = vld [vmem:[%s1734_s2 + $0x10] sm:$0xff] }
   0x8   :  { %707 = vmatpush.bf16.msra.mxu2 %v1245_v5  ;;  %157 = vperm.xlu0 %1315, %v147_v13   ;;  %v1224_v21 = vld [vmem:[%s1733_s1 + $0x8] sm:$0xff]  ;;  %v1223_v24 = vld [vmem:[%s1733_s1] sm:$0xff]  ;;  %v1198_v29 = vld [vmem:[%s1735_s0 + $0x18] sm:$0xf0] }
   0x9   :  { %v1232_v22 = vld [vmem:[%s1733_s1 + $0x48] sm:$0xff]  ;;  %v1231_v26 = vld [vmem:[%s1733_s1 + $0x40] sm:$0xff]  ;;  %167 = vperm.xlu1 %1316, %v149_v25   ;;  %v937_v30 = vld [vmem:[%s1735_s0 + $0x70] sm:$0xf] }
   0xa   :  { %650 = vmatpush.bf16.msra.mxu0 %v1228_v6  ;;  %1298 = vmatpush.bf16.msra.mxu3 %v1228_v6  ;;  %v1240_v23 = vld [vmem:[%s1733_s1 + $0x88] sm:$0xff]  ;;  %v1239_v27 = vld [vmem:[%s1733_s1 + $0x80] sm:$0xff]  ;;  %v1254_v36 = vld [vmem:[%s1733_s1 + $0xf8] sm:$0xff] }
   0xb   :  { %679 = vmatpush.bf16.msra.mxu1 %v1236_v7  ;;  %v881_v28 = vld [vmem:[%s1735_s0] sm:$0xf]  ;;  %v1212_v31 = vld [vmem:[%s1735_s0 + $0x88] sm:$0xf0]  ;;  %v1195_v32 = vld [vmem:[%s1735_s0 + $0x4] sm:$0xf] }
   0xc   :  { %708 = vmatpush.bf16.msra.mxu2 %v1244_v8  ;;  %v883_v33 = vld [vmem:[%s1735_s0 + $0x1c] sm:$0xf0]  ;;  %v889_v34 = vld [vmem:[%s1735_s0 + $0x8] sm:$0xf]  ;;  %v1199_v35 = vld [vmem:[%s1735_s0 + $0x20] sm:$0xf0]  ;;  %v882_v38 = vor.u32 %v1198_v29, %v881_v28  ;;  %v938_v39 = vor.u32 %v1212_v31, %v937_v30 }
   0xd   :  { %v1450_v37 = vld [vmem:[%s1733_s1 + $0x188] sm:$0xff]  ;;  %v886_v40 = vor.u32 %v1195_v32, %v883_v33  ;;  %v890_v41 = vor.u32 %v1199_v35, %v889_v34  ;;  %v1262_v42 = vld [vmem:[%s1733_s1 + $0x138] sm:$0xff]  ;;  %v1253_v44 = vld [vmem:[%s1733_s1 + $0xf0] sm:$0xff] }
   0xe   :  { %651 = vmatpush.bf16.msra.mxu0 %v1227_v9  ;;  %1299 = vmatpush.bf16.msra.mxu3 %v1227_v9  ;;  %v1458_v43 = vld [vmem:[%s1733_s1 + $0x178] sm:$0xff]  ;;  %v1261_v45 = vld [vmem:[%s1733_s1 + $0x130] sm:$0xff]  ;;  %v1476_v47 = vld [vmem:[%s1733_s1 + $0x180] sm:$0xff] }
   0xf   :  { %680 = vmatpush.bf16.msra.mxu1 %v1235_v10  ;;  %v1470_v46 = vld [vmem:[%s1733_s1 + $0x170] sm:$0xff]  ;;  %v150_v48 = vld [vmem:[%s1734_s2 + $0x18] sm:$0xff]  ;;  %v1252_v50 = vld [vmem:[%s1733_s1 + $0xe8] sm:$0xff] }
  0x10   :  { %709 = vmatpush.bf16.msra.mxu2 %v1243_v11  ;;  %162 = vperm.xlu0 %1315, %v148_v20   ;;  %v153_v49 = vld [vmem:[%s1734_s2 + $0x30] sm:$0xff]  ;;  %v151_v51 = vld [vmem:[%s1734_s2 + $0x20] sm:$0xff]  ;;  %v1260_v52 = vld [vmem:[%s1733_s1 + $0x128] sm:$0xff] }
  0x11   :  { %172 = vperm.xlu1 %1316, %v150_v48   ;;  %177 = vperm.xlu2 %1317, %v151_v51   ;;  %v1498_v53 = vld [vmem:[%s1733_s1 + $0x168] sm:$0xff]  ;;  %v1251_v54 = vld [vmem:[%s1733_s1 + $0xe0] sm:$0xff]  ;;  %v909_v55 = vld [vmem:[%s1735_s0 + $0x38] sm:$0xf] }
  0x12   :  { %652 = vmatpush.bf16.msra.mxu0 %v1226_v14  ;;  %1300 = vmatpush.bf16.msra.mxu3 %v1226_v14  ;;  %v1259_v56 = vld [vmem:[%s1733_s1 + $0x120] sm:$0xff]  ;;  %v1205_v57 = vld [vmem:[%s1735_s0 + $0x50] sm:$0xf0]  ;;  %v965_v58 = vld [vmem:[%s1735_s0 + $0xa8] sm:$0xf] }
  0x13   :  { %681 = vmatpush.bf16.msra.mxu1 %v1234_v15  ;;  %v154_v59 = vld [vmem:[%s1734_s2 + $0x38] sm:$0xff]  ;;  %v1219_v60 = vld [vmem:[%s1735_s0 + $0xc0] sm:$0xf0]  ;;  %v917_v63 = vld [vmem:[%s1735_s0 + $0x40] sm:$0xf]  ;;  %v910_v3 = vor.u32 %v1205_v57, %v909_v55 }
  0x14   :  { %710 = vmatpush.bf16.msra.mxu2 %v1242_v16  ;;  %v1202_v61 = vld [vmem:[%s1735_s0 + $0x3c] sm:$0xf]  ;;  %v911_v62 = vld [vmem:[%s1735_s0 + $0x54] sm:$0xf0]  ;;  %v1537_v1 = vld [vmem:[%s1733_s1 + $0x160] sm:$0xff]  ;;  %v966_v4 = vor.u32 %v1219_v60, %v965_v58 }
  0x15   :  { %v1206_v0 = vld [vmem:[%s1735_s0 + $0x58] sm:$0xf0]  ;;  %v914_v5 = vor.u32 %v1202_v61, %v911_v62  ;;  %v1249_v9 = vld [vmem:[%s1733_s1 + $0xd0] sm:$0xff]  ;;  %v152_v12 = vld [vmem:[%s1734_s2 + $0x28] sm:$0xff] }
  0x16   :  { %653 = vmatpush.bf16.msra.mxu0 %v1225_v17  ;;  %1301 = vmatpush.bf16.msra.mxu3 %v1225_v17  ;;  %v1250_v2 = vld [vmem:[%s1733_s1 + $0xd8] sm:$0xff]  ;;  %v918_v6 = vor.u32 %v1206_v0, %v917_v63  ;;  %v1257_v10 = vld [vmem:[%s1733_s1 + $0x110] sm:$0xff]  ;;  %v1248_v13 = vld [vmem:[%s1733_s1 + $0xc8] sm:$0xff] }
  0x17   :  { %682 = vmatpush.bf16.msra.mxu1 %v1233_v18  ;;  %v1258_v7 = vld [vmem:[%s1733_s1 + $0x118] sm:$0xff]  ;;  %v1265_v11 = vld [vmem:[%s1733_s1 + $0x150] sm:$0xff]  ;;  %v1256_v14 = vld [vmem:[%s1733_s1 + $0x108] sm:$0xff] }
  0x18   :  { %711 = vmatpush.bf16.msra.mxu2 %v1241_v19  ;;  %187 = vperm.xlu0 %1315, %v153_v49   ;;  %v1266_v8 = vld [vmem:[%s1733_s1 + $0x158] sm:$0xff]  ;;  %v1264_v15 = vld [vmem:[%s1733_s1 + $0x148] sm:$0xff]  ;;  %v1247_v16 = vld [vmem:[%s1733_s1 + $0xc0] sm:$0xff] }
  0x19   :  { %192 = vperm.xlu1 %1316, %v154_v59   ;;  %182 = vperm.xlu2 %1317, %v152_v12   ;;  %v1255_v17 = vld [vmem:[%s1733_s1 + $0x100] sm:$0xff]  ;;  %v1209_v18 = vld [vmem:[%s1735_s0 + $0x74] sm:$0xf]  ;;  %v939_v19 = vld [vmem:[%s1735_s0 + $0x8c] sm:$0xf0] }
  0x1a   :  { %654 = vmatpush.bf16.msra.mxu0 %v1224_v21  ;;  %1302 = vmatpush.bf16.msra.mxu3 %v1224_v21  ;;  %v1196_v20 = vld [vmem:[%s1735_s0 + $0xc] sm:$0xf]  ;;  %v891_v21 = vld [vmem:[%s1735_s0 + $0x24] sm:$0xf0]  ;;  %v897_v25 = vld [vmem:[%s1735_s0 + $0x10] sm:$0xf]  ;;  %v942_v28 = vor.u32 %v1209_v18, %v939_v19 }
  0x1b   :  { %683 = vmatpush.bf16.msra.mxu1 %v1232_v22  ;;  %v945_v22 = vld [vmem:[%s1735_s0 + $0x78] sm:$0xf]  ;;  %v1216_v31 = vld [vmem:[%s1735_s0 + $0xac] sm:$0xf]  ;;  %v1203_v32 = vld [vmem:[%s1735_s0 + $0x44] sm:$0xf] }
  0x1c   :  { %712 = vmatpush.bf16.msra.mxu2 %v1240_v23  ;;  %v1213_v23 = vld [vmem:[%s1735_s0 + $0x90] sm:$0xf0]  ;;  %v919_v33 = vld [vmem:[%s1735_s0 + $0x5c] sm:$0xf0]  ;;  %v967_v34 = vld [vmem:[%s1735_s0 + $0xc4] sm:$0xf0] }
  0x1d   :  { %v946_v29 = vor.u32 %v1213_v23, %v945_v22  ;;  %v973_v35 = vld [vmem:[%s1735_s0 + $0xb0] sm:$0xf]  ;;  %v1201_v48 = vld [vmem:[%s1735_s0 + $0x30] sm:$0xf0]  ;;  %v953_v49 = vld [vmem:[%s1735_s0 + $0x80] sm:$0xf] }
  0x1e   :  { %655 = vmatpush.bf16.msra.mxu0 %v1223_v24  ;;  %1303 = vmatpush.bf16.msra.mxu3 %v1223_v24  ;;  %v1263_v24 = vld [vmem:[%s1733_s1 + $0x140] sm:$0xff]  ;;  %v1217_v55 = vld [vmem:[%s1735_s0 + $0xb4] sm:$0xf]  ;;  %v933_v59 = vld [vmem:[%s1735_s0 + $0x50] sm:$0xf] }
  0x1f   :  { %684 = vmatpush.bf16.msra.mxu1 %v1231_v26  ;;  %v1200_v26 = vld [vmem:[%s1735_s0 + $0x28] sm:$0xf0]  ;;  %v1211_v57 = vld [vmem:[%s1735_s0 + $0x84] sm:$0xf]  ;;  %v955_v58 = vld [vmem:[%s1735_s0 + $0x9c] sm:$0xf0] }
  0x20   :  { %713 = vmatpush.bf16.msra.mxu2 %v1239_v27  ;;  %v894_v27 = vor.u32 %v1196_v20, %v891_v21  ;;  %v898_v30 = vor.u32 %v1200_v26, %v897_v25  ;;  %v1208_v60 = vld [vmem:[%s1735_s0 + $0x68] sm:$0xf0]  ;;  %v981_v61 = vld [vmem:[%s1735_s0 + $0xb8] sm:$0xf]  ;;  %v1221_v62 = vld [vmem:[%s1735_s0 + $0xd0] sm:$0xf0]  ;;  %v958_v0 = vor.u32 %v1211_v57, %v955_v58 }
  0x21   :  { %656 = vmatmul.bf16.vlgmr.msra.gmra.mxu0 %v882_v38  ;;  %666 = vmatmul.bf16.vlgmr.msra.gmra.mxu3 %v938_v39  ;;  %v1207_v38 = vld [vmem:[%s1735_s0 + $0x60] sm:$0xf0]  ;;  %v922_v39 = vor.u32 %v1203_v32, %v919_v33 }
  0x22   :  { %735 = vmatpush.bf16.msrb.mxu3 %v1254_v36  ;;  %685 = vmatmul.bf16.vlgmr.msra.gmra.mxu1 %v886_v40  ;;  %v1220_v36 = vld [vmem:[%s1735_s0 + $0xc8] sm:$0xf0]  ;;  %v970_v40 = vor.u32 %v1216_v31, %v967_v34 }
  0x23   :  { %714 = vmatmul.bf16.vlgmr.msra.gmra.mxu2 %v890_v41  ;;  %764 = vmatpush.bf16.msrb.mxu0 %v1262_v42  ;;  %v974_v41 = vor.u32 %v1220_v36, %v973_v35 }
  0x24   :  { %828 = vmatpush.bf16.msrb.mxu2 %v1450_v37  ;;  %1304 = vmatpush.bf16.msrb.mxu1 %v1458_v43 }
  0x26   :  { %736 = vmatpush.bf16.msrb.mxu3 %v1253_v44  ;;  %v947_v44 = vld [vmem:[%s1735_s0 + $0x94] sm:$0xf0] }
  0x27   :  { %765 = vmatpush.bf16.msrb.mxu0 %v1261_v45  ;;  %v1204_v45 = vld [vmem:[%s1735_s0 + $0x4c] sm:$0xf] }
  0x28   :  { %829 = vmatpush.bf16.msrb.mxu2 %v1476_v47  ;;  %1305 = vmatpush.bf16.msrb.mxu1 %v1470_v46 }
  0x2a   :  { %737 = vmatpush.bf16.msrb.mxu3 %v1252_v50  ;;  %v1214_v50 = vld [vmem:[%s1735_s0 + $0x98] sm:$0xf0] }
  0x2b   :  { %766 = vmatpush.bf16.msrb.mxu0 %v1260_v52 }
  0x2c   :  { %1306 = vmatpush.bf16.msrb.mxu1 %v1498_v53 }
  0x2e   :  { %738 = vmatpush.bf16.msrb.mxu3 %v1251_v54  ;;  %v954_v54 = vor.u32 %v1214_v50, %v953_v49 }
  0x2f   :  { %767 = vmatpush.bf16.msrb.mxu0 %v1259_v56  ;;  %v975_v56 = vld [vmem:[%s1735_s0 + $0xcc] sm:$0xf0] }
  0x30   :  { %1307 = vmatpush.bf16.msrb.mxu1 %v1537_v1  ;;  %v978_v63 = vor.u32 %v1217_v55, %v975_v56 }
  0x31   :  { %661 = vmatmul.bf16.gmra.mxu0 %v910_v3  ;;  %671 = vmatmul.bf16.gmra.mxu3 %v966_v4  ;;  %v1218_v3 = vld [vmem:[%s1735_s0 + $0xbc] sm:$0xf]  ;;  %v989_v4 = vld [vmem:[%s1735_s0 + $0xc0] sm:$0xf] }
  0x32   :  { %739 = vmatpush.bf16.msrb.mxu3 %v1250_v2  ;;  %690 = vmatmul.bf16.gmra.mxu1 %v914_v5  ;;  %v982_v2 = vor.u32 %v1221_v62, %v981_v61  ;;  %v1222_v5 = vld [vmem:[%s1735_s0 + $0xd8] sm:$0xf0] }
  0x33   :  { %719 = vmatmul.bf16.gmra.mxu2 %v918_v6  ;;  %768 = vmatpush.bf16.msrb.mxu0 %v1258_v7  ;;  %v983_v6 = vld [vmem:[%s1735_s0 + $0xd4] sm:$0xf0]  ;;  %v961_v7 = vld [vmem:[%s1735_s0 + $0x88] sm:$0xf] }
  0x34   :  { %1308 = vmatpush.bf16.msrb.mxu1 %v1266_v8  ;;  %v986_v12 = vor.u32 %v1218_v3, %v983_v6 }
  0x36   :  { %740 = vmatpush.bf16.msrb.mxu3 %v1249_v9  ;;  %v1197_v9 = vld [vmem:[%s1735_s0 + $0x14] sm:$0xf] }
  0x37   :  { %769 = vmatpush.bf16.msrb.mxu0 %v1257_v10  ;;  %v899_v10 = vld [vmem:[%s1735_s0 + $0x2c] sm:$0xf0] }
  0x38   :  { %1309 = vmatpush.bf16.msrb.mxu1 %v1265_v11 }
  0x3a   :  { %741 = vmatpush.bf16.msrb.mxu3 %v1248_v13 }
  0x3b   :  { %770 = vmatpush.bf16.msrb.mxu0 %v1256_v14  ;;  %v902_v14 = vor.u32 %v1197_v9, %v899_v10 }
  0x3c   :  { %1310 = vmatpush.bf16.msrb.mxu1 %v1264_v15 }
  0x3e   :  { %742 = vmatpush.bf16.msrb.mxu3 %v1247_v16 }
  0x3f   :  { %771 = vmatpush.bf16.msrb.mxu0 %v1255_v17 }
  0x40   :  { %1311 = vmatpush.bf16.msrb.mxu1 %v1263_v24 }
  0x41   :  { %743 = vmatmul.bf16.vlgmr.msrb.gmra.mxu3 %v894_v27 }
  0x42   :  { %1312 = vmatpush.bf16.msra.mxu3 %v1450_v37  ;;  %695 = vmatmul.bf16.gmra.mxu1 %v942_v28  ;;  %v925_v37 = vld [vmem:[%s1735_s0 + $0x48] sm:$0xf] }
  0x43   :  { %793 = vmatpush.bf16.msra.mxu0 %v1458_v43  ;;  %724 = vmatmul.bf16.gmra.mxu2 %v946_v29  ;;  %v926_v42 = vor.u32 %v1207_v38, %v925_v37  ;;  %v1210_v43 = vld [vmem:[%s1735_s0 + $0x7c] sm:$0xf] }
  0x44   :  { %772 = vmatmul.bf16.vlgmr.msrb.gmra.mxu0 %v898_v30  ;;  %v950_v51 = vor.u32 %v1210_v43, %v947_v44 }
  0x46   :  { %1313 = vmatpush.bf16.msra.mxu3 %v1476_v47  ;;  %v905_v47 = vld [vmem:[%s1735_s0 + $0x18] sm:$0xf] }
  0x47   :  { %794 = vmatpush.bf16.msra.mxu0 %v1470_v46  ;;  %v927_v46 = vld [vmem:[%s1735_s0 + $0x64] sm:$0xf0] }
  0x48   :  { %v930_v52 = vor.u32 %v1204_v45, %v927_v46 }
  0x4b   :  { %795 = vmatpush.bf16.msra.mxu0 %v1498_v53  ;;  %v906_v53 = vor.u32 %v1201_v48, %v905_v47 }
  0x4f   :  { %796 = vmatpush.bf16.msra.mxu0 %v1537_v1  ;;  %v934_v1 = vor.u32 %v1208_v60, %v933_v59 }
  0x51   :  { %748 = vmatmul.bf16.gmra.mxu3 %v922_v39 }
  0x52   :  { %700 = vmatmul.bf16.gmra.mxu1 %v970_v40 }
  0x53   :  { %797 = vmatpush.bf16.msra.mxu0 %v1266_v8  ;;  %729 = vmatmul.bf16.gmra.mxu2 %v974_v41  ;;  %v1215_v8 = vld [vmem:[%s1735_s0 + $0xa0] sm:$0xf0] }
  0x54   :  { %777 = vmatmul.bf16.gmra.mxu0 %v926_v42  ;;  %v962_v13 = vor.u32 %v1215_v8, %v961_v7 }
  0x57   :  { %798 = vmatpush.bf16.msra.mxu0 %v1265_v11  ;;  %v990_v11 = vor.u32 %v1222_v5, %v989_v4 }
  0x5b   :  { %799 = vmatpush.bf16.msra.mxu0 %v1264_v15 }
  0x5f   :  { %800 = vmatpush.bf16.msra.mxu0 %v1263_v24 }
  0x61   :  { %753 = vmatmul.bf16.gmra.mxu3 %v950_v51 }
  0x62   :  { %806 = vmatmul.bf16.vlgmr.msrb.gmra.mxu1 %v930_v52 }
  0x63   :  { %1191 = vmatmul.msk.bf16.vlgmr.msrb.gmra.mxu2 %vm635_vm0, %v906_v53 }
  0x64   :  { %782 = vmatmul.bf16.gmra.mxu0 %v954_v54 }
  0x6b   :  { %v178_v41 = vpop.permute.xlu2 %177 }
  0x71   :  { %758 = vmatmul.bf16.gmra.mxu3 %v978_v63 }
  0x72   :  { %811 = vmatmul.bf16.gmra.mxu1 %v958_v0 }
  0x73   :  { %1192 = vmatmul.msk.bf16.gmra.mxu2 %vm635_vm0, %v934_v1 }
  0x74   :  { %787 = vmatmul.bf16.gmra.mxu0 %v982_v2 }
  0x7a   :  { %v158_v15 = vpop.permute.xlu0 %157 }
  0x7b   :  { %v168_v30 = vpop.permute.xlu1 %167 }
  0x81   :  { %1194 = vmatmul.msk.bf16.vlgmr.msra.gmra.mxu3 %vm635_vm0, %v990_v11 }
  0x82   :  { %816 = vmatmul.bf16.gmra.mxu1 %v986_v12  ;;  %v163_v21 = vpop.permute.xlu0 %162 }
  0x83   :  { %1193 = vmatmul.msk.bf16.gmra.mxu2 %vm635_vm0, %v962_v13  ;;  %v173_v8 = vpop.permute.xlu1 %172 }
  0x84   :  { %801 = vmatmul.bf16.vlgmr.msra.gmra.mxu0 %v902_v14 }
  0x9e   :  { %v657_v16 = vpop.f32.mrf.mxu0 }
  0x9f   :  { %v658_v17 = vadd.f32 %v657_v16, %v158_v15  ;;  %v686_v18 = vpop.f32.mrf.mxu1 }
  0xa1   :  { %v687_v19 = vadd.f32 %v686_v18, %v658_v17 }
  0xa4   :  { %v667_v20 = vpop.f32.mrf.mxu3 }
  0xa5   :  { %v668_v44 = vadd.f32 %v667_v20, %v178_v41 }
  0xa6   :  { %v715_v22 = vpop.f32.mrf.mxu2  ;;  %v659_v24 = vpop.f32.mrf.mxu0 }
  0xa7   :  { %v716_v23 = vadd.f32 %v715_v22, %v687_v19  ;;  %v660_v25 = vadd.f32 %v659_v24, %v163_v21  ;;  %v688_v26 = vpop.f32.mrf.mxu1  ;;  %v188_v22 = vpop.permute.xlu0 %187 }
  0xa9   :  { %v689_v27 = vadd.f32 %v688_v26, %v660_v25  ;;  %v193_v25 = vpop.permute.xlu1 %192 }
  0xac   :  { %v1709_v28 = vpop.f32.mrf.mxu3 }
  0xae   :  { %v717_v29 = vpop.f32.mrf.mxu2  ;;  %v662_v32 = vpop.f32.mrf.mxu0 }
  0xaf   :  { %v1711_v31 = vadd.f32 %v717_v29, %v689_v27  ;;  %v663_v33 = vadd.f32 %v662_v32, %v168_v30  ;;  %v691_v34 = vpop.f32.mrf.mxu1  ;;  %v183_v30 = vpop.permute.xlu2 %182 }
  0xb1   :  { %v692_v35 = vadd.f32 %v691_v34, %v663_v33 }
  0xb4   :  { %v672_v36 = vpop.f32.mrf.mxu3 }
  0xb5   :  { %v673_v32 = vadd.f32 %v672_v36, %v188_v22 }
  0xb6   :  { %v720_v37 = vpop.f32.mrf.mxu2  ;;  %v664_v39 = vpop.f32.mrf.mxu0 }
  0xb7   :  { %v721_v38 = vadd.f32 %v720_v37, %v692_v35  ;;  %v693_v40 = vpop.f32.mrf.mxu1  ;;  %v665_v10 = vadd.f32 %v664_v39, %v173_v8  ;;  %v670_v39 = vadd.f32 %v1709_v28, %v183_v30 }
  0xb9   :  { %v694_v13 = vadd.f32 %v693_v40, %v665_v10 }
  0xbc   :  { %v674_v42 = vpop.f32.mrf.mxu3 }
  0xbd   :  { %v675_v35 = vadd.f32 %v674_v42, %v193_v25 }
  0xbe   :  { %v722_v43 = vpop.f32.mrf.mxu2 }
  0xbf   :  { %v696_v45 = vpop.f32.mrf.mxu1  ;;  %v723_v14 = vadd.f32 %v722_v43, %v694_v13 }
  0xc0   :  { %v697_v46 = vadd.f32 %v696_v45, %v668_v44 }
  0xc1   :  { %v773_v47 = vpop.f32.mrf.mxu0 }
  0xc4   :  { %v744_v48 = vpop.f32.mrf.mxu3 }
  0xc5   :  { %v745_v50 = vadd.f32 %v744_v48, %v716_v23 }
  0xc6   :  { %v725_v49 = vpop.f32.mrf.mxu2 }
  0xc7   :  { %v726_v51 = vadd.f32 %v725_v49, %v697_v46  ;;  %v698_v52 = vpop.f32.mrf.mxu1  ;;  %v1713_v53 = vadd.f32 %v773_v47, %v745_v50 }
  0xc8   :  { %v699_v46 = vadd.f32 %v698_v52, %v670_v39 }
  0xc9   :  { %v1715_v54 = vpop.f32.mrf.mxu0 }
  0xcc   :  { %v746_v55 = vpop.f32.mrf.mxu3 }
  0xcd   :  { %v747_v48 = vadd.f32 %v746_v55, %v1711_v31 }
  0xce   :  { %v727_v56 = vpop.f32.mrf.mxu2 }
  0xcf   :  { %v701_v57 = vpop.f32.mrf.mxu1  ;;  %v776_v52 = vadd.f32 %v1715_v54, %v747_v48 }
  0xd0   :  { %v702_v37 = vadd.f32 %v701_v57, %v673_v32 }
  0xd1   :  { %v778_v58 = vpop.f32.mrf.mxu0 }
  0xd4   :  { %v749_v59 = vpop.f32.mrf.mxu3 }
  0xd5   :  { %v750_v15 = vadd.f32 %v749_v59, %v721_v38 }
  0xd6   :  { %v730_v60 = vpop.f32.mrf.mxu2 }
  0xd7   :  { %v703_v61 = vpop.f32.mrf.mxu1  ;;  %v779_v20 = vadd.f32 %v778_v58, %v750_v15  ;;  %v731_v44 = vadd.f32 %v730_v60, %v702_v37  ;;  %v728_v58 = vadd.f32 %v727_v56, %v699_v46 }
  0xd8   :  { %v704_v45 = vadd.f32 %v703_v61, %v675_v35 }
  0xd9   :  { %v780_v62 = vpop.f32.mrf.mxu0 }
  0xdc   :  { %v751_v63 = vpop.f32.mrf.mxu3 }
  0xdd   :  { %v752_v18 = vadd.f32 %v751_v63, %v723_v14 }
  0xde   :  { %v732_v0 = vpop.f32.mrf.mxu2 }
  0xdf   :  { %v807_v1 = vpop.f32.mrf.mxu1  ;;  %v781_v24 = vadd.f32 %v780_v62, %v752_v18  ;;  %v733_v49 = vadd.f32 %v732_v0, %v704_v45 }
  0xe0   :  { %v808_v23 = vadd.f32 %v807_v1, %v779_v20 }
  0xe1   :  { %v783_v2 = vpop.f32.mrf.mxu0 }
  0xe4   :  { %v754_v3 = vpop.f32.mrf.mxu3 }
  0xe5   :  { %v755_v36 = vadd.f32 %v754_v3, %v726_v51 }
  0xe6   :  { %v831_v4 = vpop.f32.mrf.mxu2 }
  0xe7   :  { %v809_v5 = vpop.f32.mrf.mxu1  ;;  %v784_v61 = vadd.f32 %v783_v2, %v755_v36 }
  0xe8   :  { %v810_v26 = vadd.f32 %v809_v5, %v781_v24 }
  0xe9   :  { %v785_v6 = vpop.f32.mrf.mxu0 }
  0xec   :  { %v756_v7 = vpop.f32.mrf.mxu3 }
  0xed   :  { %v757_v62 = vadd.f32 %v756_v7, %v728_v58 }
  0xee   :  { %v833_v9 = vpop.f32.mrf.mxu2 }
  0xef   :  { %v812_v11 = vpop.f32.mrf.mxu1  ;;  %v786_v3 = vadd.f32 %v785_v6, %v757_v62 }
  0xf0   :  { %v813_v1 = vadd.f32 %v812_v11, %v784_v61 }
  0xf1   :  { %v788_v12 = vpop.f32.mrf.mxu0 }
  0xf4   :  { %v759_v16 = vpop.f32.mrf.mxu3 }
  0xf5   :  { %v760_v50 = vadd.f32 %v759_v16, %v731_v44 }
  0xf6   :  { %v836_v17 = vpop.f32.mrf.mxu2 }
  0xf7   :  { %v814_v19 = vpop.f32.mrf.mxu1  ;;  %v837_v27 = vadd.f32 %v836_v17, %v808_v23  ;;  %v789_v60 = vadd.f32 %v788_v12, %v760_v50 }
  0xf8   :  { %v815_v13 = vadd.f32 %v814_v19, %v786_v3 }
  0xf9   :  { %v790_v21 = vpop.f32.mrf.mxu0  ;;  %v853_v40 = vmax.f32 %v837_v27, 0.0 }
  0xfc   :  { %v761_v29 = vpop.f32.mrf.mxu3 }
  0xfd   :  { %v762_v57 = vadd.f32 %v761_v29, %v733_v49 }
  0xfe   :  { %v838_v33 = vpop.f32.mrf.mxu2 }
  0xff   :  { %v839_v34 = vadd.f32 %v838_v33, %v810_v26  ;;  %v817_v38 = vpop.f32.mrf.mxu1  ;;  %v791_v51 = vadd.f32 %v790_v21, %v762_v57 }
 0x100   :  { %v818_v0 = vadd.f32 %v817_v38, %v789_v60 }
 0x101   :  { %v854_v41 = vmax.f32 %v839_v34, 0.0  ;;  %v802_v43 = vpop.f32.mrf.mxu0 }
 0x102   :  { %v803_v28 = vadd.f32 %v802_v43, %v1713_v53 }
 0x103   :  { %v1281_v47 = vpack.c.bf16 %v854_v41, %v853_v40 }
 0x104   :  { %v846_v42 = vpop.f32.mrf.mxu3  ;;  %v832_v55 = vadd.f32 %v831_v4, %v803_v28 }
 0x105   :  { %1293 = vst [vmem:[%s1736_s3 + $0x8] sm:$0xff] %v1281_v47   ;;  %v847_v5 = vadd.f32 %v846_v42, %v818_v0 }
 0x106   :  { %v841_v59 = vpop.f32.mrf.mxu2  ;;  %v851_v15 = vmax.f32 %v832_v55, 0.0 }
 0x107   :  { %v819_v31 = vpop.f32.mrf.mxu1  ;;  %v842_v14 = vadd.f32 %v841_v59, %v813_v1  ;;  %v857_v2 = vmax.f32 %v847_v5, 0.0 }
 0x108   :  { %v820_v10 = vadd.f32 %v819_v31, %v791_v51 }
 0x109   :  { %v804_v63 = vpop.f32.mrf.mxu0  ;;  %v855_v4 = vmax.f32 %v842_v14, 0.0 }
 0x10a   :  { %v805_v56 = vadd.f32 %v804_v63, %v776_v52 }
 0x10c   :  { %v834_v8 = vadd.f32 %v833_v9, %v805_v56  ;;  %v848_v53 = vpop.f32.mrf.mxu3 }
 0x10d   :  { %v849_v16 = vadd.f32 %v848_v53, %v820_v10 }
 0x10e   :  { %v852_v7 = vmax.f32 %v834_v8, 0.0  ;;  %v843_v12 = vpop.f32.mrf.mxu2 }
 0x10f   :  { %v844_v54 = vadd.f32 %v843_v12, %v815_v13  ;;  %v858_v18 = vmax.f32 %v849_v16, 0.0 }
 0x110   :  { %v1276_v17 = vpack.c.bf16 %v852_v7, %v851_v15 }
 0x111   :  { %v856_v20 = vmax.f32 %v844_v54, 0.0  ;;  %v1291_v6 = vpack.c.bf16 %v858_v18, %v857_v2 }
 0x112   :  { %1277 = vst [vmem:[%s1736_s3] sm:$0xff] %v1276_v17  }
 0x113   :  { %v1286_v9 = vpack.c.bf16 %v856_v20, %v855_v4  ;;  %1295 = vst [vmem:[%s1736_s3 + $0x18] sm:$0xff] %v1291_v6  }
 0x115   :  { %1294 = vst [vmem:[%s1736_s3 + $0x10] sm:$0xff] %v1286_v9  }

// kernel: primer_cnn_forward.7
= control target key start
LH: loop header
LB: loop body
LE: loop exit
PB: predicated region body
PF: predicated region fallthrough
CT: control target
= control target key end

     0   :  { %vm490_vm0 = vcmask 523264   ;;  %s1876_s1 = inlined_call_operand.vmem [shape: bf16[576,256], index: 1, kind: input, shape index: {}]   ;;  %s1877_s0 = inlined_call_operand.vmem [shape: bf16[16,576], index: 0, kind: input, shape index: {}]   ;;  %s1878_s4 = inlined_call_operand.vmem [shape: f32[1,128], index: 4, kind: input, shape index: {}]   ;;  %s1879_s3 = inlined_call_operand.vmem [shape: bf16[256,128], index: 3, kind: input, shape index: {}]   ;;  %s1880_s2 = inlined_call_operand.vmem [shape: f32[1,256], index: 2, kind: input, shape index: {}]   ;;  %s1881_s5 = inlined_call_operand.vmem [shape: f32[16,128], index: 5, kind: output, shape index: {}]  }
   0x1   :  { %v904_v0 = vld [vmem:[%s1876_s1 + $0x70] sm:$0xf]  ;;  %v1220_v1 = vld [vmem:[%s1876_s1 + $0x74] sm:$0xf0]  ;;  %v896_v11 = vld [vmem:[%s1876_s1 + $0x60] sm:$0xf] }
   0x2   :  { %v968_v2 = vld [vmem:[%s1876_s1 + $0xf0] sm:$0xf]  ;;  %v905_v3 = vor.u32 %v1220_v1, %v904_v0  ;;  %v1236_v4 = vld [vmem:[%s1876_s1 + $0xf4] sm:$0xf0]  ;;  %v1218_v13 = vld [vmem:[%s1876_s1 + $0x64] sm:$0xf0] }
   0x3   :  { %v1032_v5 = vld [vmem:[%s1876_s1 + $0x170] sm:$0xf]  ;;  %v1252_v6 = vld [vmem:[%s1876_s1 + $0x174] sm:$0xf0]  ;;  %v969_v7 = vor.u32 %v1236_v4, %v968_v2  ;;  %v960_v14 = vld [vmem:[%s1876_s1 + $0xe0] sm:$0xf]  ;;  %v897_v16 = vor.u32 %v1218_v13, %v896_v11 }
   0x4   :  { %v1033_v8 = vor.u32 %v1252_v6, %v1032_v5  ;;  %v1096_v9 = vld [vmem:[%s1876_s1 + $0x1f0] sm:$0xf]  ;;  %v1268_v10 = vld [vmem:[%s1876_s1 + $0x1f4] sm:$0xf0]  ;;  %494 = vmatpush.bf16.msra.mxu0 %v905_v3  ;;  %v1234_v15 = vld [vmem:[%s1876_s1 + $0xe4] sm:$0xf0] }
   0x5   :  { %v1097_v12 = vor.u32 %v1268_v10, %v1096_v9  ;;  %508 = vmatpush.bf16.msra.mxu1 %v969_v7  ;;  %v961_v17 = vor.u32 %v1234_v15, %v960_v14  ;;  %v1024_v18 = vld [vmem:[%s1876_s1 + $0x160] sm:$0xf]  ;;  %v1250_v19 = vld [vmem:[%s1876_s1 + $0x164] sm:$0xf0]  ;;  %v888_v23 = vld [vmem:[%s1876_s1 + $0x50] sm:$0xf] }
   0x6   :  { %522 = vmatpush.bf16.msra.mxu2 %v1033_v8  ;;  %v1088_v20 = vld [vmem:[%s1876_s1 + $0x1e0] sm:$0xf]  ;;  %v1025_v21 = vor.u32 %v1250_v19, %v1024_v18  ;;  %v1266_v22 = vld [vmem:[%s1876_s1 + $0x1e4] sm:$0xf0]  ;;  %v1216_v24 = vld [vmem:[%s1876_s1 + $0x54] sm:$0xf0] }
   0x7   :  { %536 = vmatpush.bf16.msra.mxu3 %v1097_v12  ;;  %v1089_v25 = vor.u32 %v1266_v22, %v1088_v20  ;;  %v952_v26 = vld [vmem:[%s1876_s1 + $0xd0] sm:$0xf]  ;;  %v1232_v27 = vld [vmem:[%s1876_s1 + $0xd4] sm:$0xf0]  ;;  %v889_v29 = vor.u32 %v1216_v24, %v888_v23  ;;  %v880_v35 = vld [vmem:[%s1876_s1 + $0x40] sm:$0xf] }
   0x8   :  { %v1016_v28 = vld [vmem:[%s1876_s1 + $0x150] sm:$0xf]  ;;  %495 = vmatpush.bf16.msra.mxu0 %v897_v16  ;;  %v1248_v30 = vld [vmem:[%s1876_s1 + $0x154] sm:$0xf0]  ;;  %v953_v33 = vor.u32 %v1232_v27, %v952_v26  ;;  %v1214_v36 = vld [vmem:[%s1876_s1 + $0x44] sm:$0xf0] }
   0x9   :  { %v1080_v31 = vld [vmem:[%s1876_s1 + $0x1d0] sm:$0xf]  ;;  %v1264_v32 = vld [vmem:[%s1876_s1 + $0x1d4] sm:$0xf0]  ;;  %509 = vmatpush.bf16.msra.mxu1 %v961_v17  ;;  %v1017_v34 = vor.u32 %v1248_v30, %v1016_v28  ;;  %v944_v37 = vld [vmem:[%s1876_s1 + $0xc0] sm:$0xf]  ;;  %v881_v44 = vor.u32 %v1214_v36, %v880_v35 }
   0xa   :  { %523 = vmatpush.bf16.msra.mxu2 %v1025_v21  ;;  %v1081_v38 = vor.u32 %v1264_v32, %v1080_v31  ;;  %v1230_v39 = vld [vmem:[%s1876_s1 + $0xc4] sm:$0xf0]  ;;  %v1008_v40 = vld [vmem:[%s1876_s1 + $0x140] sm:$0xf]  ;;  %v872_v47 = vld [vmem:[%s1876_s1 + $0x30] sm:$0xf] }
   0xb   :  { %537 = vmatpush.bf16.msra.mxu3 %v1089_v25  ;;  %v1246_v41 = vld [vmem:[%s1876_s1 + $0x144] sm:$0xf0]  ;;  %v1072_v42 = vld [vmem:[%s1876_s1 + $0x1c0] sm:$0xf]  ;;  %v945_v45 = vor.u32 %v1230_v39, %v944_v37  ;;  %v1212_v48 = vld [vmem:[%s1876_s1 + $0x34] sm:$0xf0] }
   0xc   :  { %v1262_v43 = vld [vmem:[%s1876_s1 + $0x1c4] sm:$0xf0]  ;;  %496 = vmatpush.bf16.msra.mxu0 %v889_v29  ;;  %v1009_v46 = vor.u32 %v1246_v41, %v1008_v40  ;;  %v936_v49 = vld [vmem:[%s1876_s1 + $0xb0] sm:$0xf]  ;;  %v1228_v51 = vld [vmem:[%s1876_s1 + $0xb4] sm:$0xf0]  ;;  %v873_v56 = vor.u32 %v1212_v48, %v872_v47 }
   0xd   :  { %510 = vmatpush.bf16.msra.mxu1 %v953_v33  ;;  %v1073_v50 = vor.u32 %v1262_v43, %v1072_v42  ;;  %v1000_v52 = vld [vmem:[%s1876_s1 + $0x130] sm:$0xf]  ;;  %v1244_v53 = vld [vmem:[%s1876_s1 + $0x134] sm:$0xf0]  ;;  %v937_v57 = vor.u32 %v1228_v51, %v936_v49  ;;  %v864_v59 = vld [vmem:[%s1876_s1 + $0x20] sm:$0xf] }
   0xe   :  { %524 = vmatpush.bf16.msra.mxu2 %v1017_v34  ;;  %v1064_v54 = vld [vmem:[%s1876_s1 + $0x1b0] sm:$0xf]  ;;  %v1260_v55 = vld [vmem:[%s1876_s1 + $0x1b4] sm:$0xf0]  ;;  %v1001_v58 = vor.u32 %v1244_v53, %v1000_v52  ;;  %v1210_v60 = vld [vmem:[%s1876_s1 + $0x24] sm:$0xf0] }
   0xf   :  { %538 = vmatpush.bf16.msra.mxu3 %v1081_v38  ;;  %v928_v61 = vld [vmem:[%s1876_s1 + $0xa0] sm:$0xf]  ;;  %v1065_v62 = vor.u32 %v1260_v55, %v1064_v54  ;;  %v1226_v63 = vld [vmem:[%s1876_s1 + $0xa4] sm:$0xf0]  ;;  %v865_v4 = vor.u32 %v1210_v60, %v864_v59  ;;  %v856_v5 = vld [vmem:[%s1876_s1 + $0x10] sm:$0xf] }
  0x10   :  { %497 = vmatpush.bf16.msra.mxu0 %v881_v44  ;;  %v992_v0 = vld [vmem:[%s1876_s1 + $0x120] sm:$0xf]  ;;  %v1242_v1 = vld [vmem:[%s1876_s1 + $0x124] sm:$0xf0]  ;;  %v929_v6 = vor.u32 %v1226_v63, %v928_v61  ;;  %v1208_v8 = vld [vmem:[%s1876_s1 + $0x14] sm:$0xf0] }
  0x11   :  { %511 = vmatpush.bf16.msra.mxu1 %v945_v45  ;;  %v1056_v2 = vld [vmem:[%s1876_s1 + $0x1a0] sm:$0xf]  ;;  %v1258_v3 = vld [vmem:[%s1876_s1 + $0x1a4] sm:$0xf0]  ;;  %v993_v7 = vor.u32 %v1242_v1, %v992_v0  ;;  %v920_v9 = vld [vmem:[%s1876_s1 + $0x90] sm:$0xf]  ;;  %v857_v18 = vor.u32 %v1208_v8, %v856_v5 }
  0x12   :  { %525 = vmatpush.bf16.msra.mxu2 %v1009_v46  ;;  %v1224_v10 = vld [vmem:[%s1876_s1 + $0x94] sm:$0xf0]  ;;  %v1057_v11 = vor.u32 %v1258_v3, %v1056_v2  ;;  %v984_v12 = vld [vmem:[%s1876_s1 + $0x110] sm:$0xf]  ;;  %v848_v16 = vld [vmem:[%s1876_s1] sm:$0xf] }
  0x13   :  { %539 = vmatpush.bf16.msra.mxu3 %v1073_v50  ;;  %v1240_v13 = vld [vmem:[%s1876_s1 + $0x114] sm:$0xf0]  ;;  %v1048_v14 = vld [vmem:[%s1876_s1 + $0x190] sm:$0xf]  ;;  %v1206_v17 = vld [vmem:[%s1876_s1 + $0x4] sm:$0xf0]  ;;  %v921_v23 = vor.u32 %v1224_v10, %v920_v9 }
  0x14   :  { %498 = vmatpush.bf16.msra.mxu0 %v873_v56  ;;  %v1256_v15 = vld [vmem:[%s1876_s1 + $0x194] sm:$0xf0]  ;;  %v912_v19 = vld [vmem:[%s1876_s1 + $0x80] sm:$0xf]  ;;  %v1222_v20 = vld [vmem:[%s1876_s1 + $0x84] sm:$0xf0]  ;;  %v985_v24 = vor.u32 %v1240_v13, %v984_v12  ;;  %v849_v35 = vor.u32 %v1206_v17, %v848_v16 }
  0x15   :  { %512 = vmatpush.bf16.msra.mxu1 %v937_v57  ;;  %v976_v21 = vld [vmem:[%s1876_s1 + $0x100] sm:$0xf]  ;;  %v1238_v22 = vld [vmem:[%s1876_s1 + $0x104] sm:$0xf0]  ;;  %v1128_v27 = vld [vmem:[%s1876_s1 + $0x230] sm:$0xf]  ;;  %v1049_v28 = vor.u32 %v1256_v15, %v1048_v14  ;;  %v913_v39 = vor.u32 %v1222_v20, %v912_v19 }
  0x16   :  { %526 = vmatpush.bf16.msra.mxu2 %v1001_v58  ;;  %v1040_v25 = vld [vmem:[%s1876_s1 + $0x180] sm:$0xf]  ;;  %v1254_v26 = vld [vmem:[%s1876_s1 + $0x184] sm:$0xf0]  ;;  %v1276_v29 = vld [vmem:[%s1876_s1 + $0x234] sm:$0xf0]  ;;  %v977_v40 = vor.u32 %v1238_v22, %v976_v21 }
  0x17   :  { %540 = vmatpush.bf16.msra.mxu3 %v1065_v62  ;;  %v1219_v30 = vld [vmem:[%s1876_s1 + $0x74] sm:$0xf]  ;;  %v906_v31 = vld [vmem:[%s1876_s1 + $0x78] sm:$0xf0]  ;;  %v828_v37 = vld [vmem:[%s1877_s0] sm:$0xf]  ;;  %v1041_v44 = vor.u32 %v1254_v26, %v1040_v25  ;;  %v1129_v45 = vor.u32 %v1276_v29, %v1128_v27 }
  0x18   :  { %499 = vmatpush.bf16.msra.mxu0 %v865_v4  ;;  %v1235_v32 = vld [vmem:[%s1876_s1 + $0xf4] sm:$0xf]  ;;  %v970_v33 = vld [vmem:[%s1876_s1 + $0xf8] sm:$0xf0]  ;;  %v836_v41 = vld [vmem:[%s1877_s0 + $0x8] sm:$0xf]  ;;  %v909_v49 = vor.u32 %v1219_v30, %v906_v31 }
  0x19   :  { %513 = vmatpush.bf16.msra.mxu1 %v929_v6  ;;  %v1251_v34 = vld [vmem:[%s1876_s1 + $0x174] sm:$0xf]  ;;  %v1034_v36 = vld [vmem:[%s1876_s1 + $0x178] sm:$0xf0]  ;;  %v1120_v43 = vld [vmem:[%s1876_s1 + $0x220] sm:$0xf]  ;;  %v973_v50 = vor.u32 %v1235_v32, %v970_v33 }
  0x1a   :  { %527 = vmatpush.bf16.msra.mxu2 %v993_v7  ;;  %v1202_v38 = vld [vmem:[%s1877_s0 + $0x10] sm:$0xf0]  ;;  %v1203_v42 = vld [vmem:[%s1877_s0 + $0x18] sm:$0xf0]  ;;  %v1274_v46 = vld [vmem:[%s1876_s1 + $0x224] sm:$0xf0]  ;;  %v1037_v54 = vor.u32 %v1251_v34, %v1034_v36 }
  0x1b   :  { %541 = vmatpush.bf16.msra.mxu3 %v1057_v11  ;;  %v1201_v47 = vld [vmem:[%s1877_s0 + $0xc] sm:$0xf]  ;;  %v838_v48 = vld [vmem:[%s1877_s0 + $0x1c] sm:$0xf0]  ;;  %v1217_v51 = vld [vmem:[%s1876_s1 + $0x64] sm:$0xf]  ;;  %v1581_v55 = vor.u32 %v1202_v38, %v828_v37  ;;  %v1592_v59 = vor.u32 %v1203_v42, %v836_v41  ;;  %v1121_v63 = vor.u32 %v1274_v46, %v1120_v43 }
  0x1c   :  { %500 = vmatpush.bf16.msra.mxu0 %v857_v18  ;;  %v1200_v52 = vld [vmem:[%s1877_s0 + $0x4] sm:$0xf]  ;;  %v830_v53 = vld [vmem:[%s1877_s0 + $0x14] sm:$0xf0]  ;;  %v898_v56 = vld [vmem:[%s1876_s1 + $0x68] sm:$0xf0]  ;;  %v1600_v62 = vor.u32 %v1201_v47, %v838_v48 }
  0x1d   :  { %514 = vmatpush.bf16.msra.mxu1 %v921_v23  ;;  %v1233_v57 = vld [vmem:[%s1876_s1 + $0xe4] sm:$0xf]  ;;  %v962_v58 = vld [vmem:[%s1876_s1 + $0xe8] sm:$0xf0]  ;;  %v1602_v0 = vor.u32 %v1200_v52, %v830_v53  ;;  %v901_v1 = vor.u32 %v1217_v51, %v898_v56  ;;  %v1112_v3 = vld [vmem:[%s1876_s1 + $0x210] sm:$0xf] }
  0x1e   :  { %528 = vmatpush.bf16.msra.mxu2 %v985_v24  ;;  %v1249_v60 = vld [vmem:[%s1876_s1 + $0x164] sm:$0xf]  ;;  %v1026_v61 = vld [vmem:[%s1876_s1 + $0x168] sm:$0xf0]  ;;  %v965_v2 = vor.u32 %v1233_v57, %v962_v58  ;;  %v1272_v4 = vld [vmem:[%s1876_s1 + $0x214] sm:$0xf0] }
  0x1f   :  { %542 = vmatpush.bf16.msra.mxu3 %v1049_v28  ;;  %v1215_v5 = vld [vmem:[%s1876_s1 + $0x54] sm:$0xf]  ;;  %v1029_v6 = vor.u32 %v1249_v60, %v1026_v61  ;;  %v890_v7 = vld [vmem:[%s1876_s1 + $0x58] sm:$0xf0]  ;;  %v1113_v12 = vor.u32 %v1272_v4, %v1112_v3  ;;  %v1104_v13 = vld [vmem:[%s1876_s1 + $0x200] sm:$0xf] }
  0x20   :  { %501 = vmatpush.bf16.msra.mxu0 %v849_v35  ;;  %v1231_v8 = vld [vmem:[%s1876_s1 + $0xd4] sm:$0xf]  ;;  %v954_v9 = vld [vmem:[%s1876_s1 + $0xd8] sm:$0xf0]  ;;  %v893_v14 = vor.u32 %v1215_v5, %v890_v7  ;;  %v1270_v16 = vld [vmem:[%s1876_s1 + $0x204] sm:$0xf0] }
  0x21   :  { %515 = vmatpush.bf16.msra.mxu1 %v913_v39  ;;  %v1247_v10 = vld [vmem:[%s1876_s1 + $0x154] sm:$0xf]  ;;  %v1018_v11 = vld [vmem:[%s1876_s1 + $0x158] sm:$0xf0]  ;;  %v957_v15 = vor.u32 %v1231_v8, %v954_v9  ;;  %v1213_v17 = vld [vmem:[%s1876_s1 + $0x44] sm:$0xf]  ;;  %v1105_v26 = vor.u32 %v1270_v16, %v1104_v13 }
  0x22   :  { %529 = vmatpush.bf16.msra.mxu2 %v977_v40  ;;  %v882_v18 = vld [vmem:[%s1876_s1 + $0x48] sm:$0xf0]  ;;  %v1021_v19 = vor.u32 %v1247_v10, %v1018_v11  ;;  %v1229_v20 = vld [vmem:[%s1876_s1 + $0xc4] sm:$0xf]  ;;  %v1267_v24 = vld [vmem:[%s1876_s1 + $0x1f4] sm:$0xf] }
  0x23   :  { %543 = vmatpush.bf16.msra.mxu3 %v1041_v44  ;;  %502 = vmatmul.bf16.vlgmr.msra.gmra.mxu0 %v1581_v55  ;;  %v946_v21 = vld [vmem:[%s1876_s1 + $0xc8] sm:$0xf0]  ;;  %v1245_v22 = vld [vmem:[%s1876_s1 + $0x144] sm:$0xf]  ;;  %v1098_v25 = vld [vmem:[%s1876_s1 + $0x1f8] sm:$0xf0]  ;;  %v885_v27 = vor.u32 %v1213_v17, %v882_v18 }
  0x24   :  { %554 = vmatpush.bf16.msrb.mxu0 %v1129_v45  ;;  %516 = vmatmul.bf16.vlgmr.msra.gmra.mxu1 %v1602_v0  ;;  %v1010_v23 = vld [vmem:[%s1876_s1 + $0x148] sm:$0xf0]  ;;  %v949_v28 = vor.u32 %v1229_v20, %v946_v21  ;;  %v1211_v29 = vld [vmem:[%s1876_s1 + $0x34] sm:$0xf]  ;;  %v874_v30 = vld [vmem:[%s1876_s1 + $0x38] sm:$0xf0]  ;;  %v1101_v32 = vor.u32 %v1267_v24, %v1098_v25 }
  0x25   :  { %564 = vmatpush.bf16.msrb.mxu1 %v909_v49  ;;  %530 = vmatmul.bf16.vlgmr.msra.gmra.mxu2 %v1592_v59  ;;  %v1013_v31 = vor.u32 %v1245_v22, %v1010_v23  ;;  %v1227_v33 = vld [vmem:[%s1876_s1 + $0xb4] sm:$0xf]  ;;  %v938_v34 = vld [vmem:[%s1876_s1 + $0xb8] sm:$0xf0]  ;;  %v1265_v37 = vld [vmem:[%s1876_s1 + $0x1e4] sm:$0xf]  ;;  %v877_v41 = vor.u32 %v1211_v29, %v874_v30 }
  0x26   :  { %578 = vmatpush.bf16.msrb.mxu2 %v973_v50  ;;  %544 = vmatmul.bf16.vlgmr.msra.gmra.mxu3 %v1600_v62  ;;  %v1243_v35 = vld [vmem:[%s1876_s1 + $0x134] sm:$0xf]  ;;  %v1002_v36 = vld [vmem:[%s1876_s1 + $0x138] sm:$0xf0]  ;;  %v1090_v38 = vld [vmem:[%s1876_s1 + $0x1e8] sm:$0xf0]  ;;  %v941_v42 = vor.u32 %v1227_v33, %v938_v34 }
  0x27   :  { %592 = vmatpush.bf16.msrb.mxu3 %v1037_v54  ;;  %v844_v39 = vld [vmem:[%s1877_s0 + $0x10] sm:$0xf]  ;;  %v1204_v40 = vld [vmem:[%s1877_s0 + $0x20] sm:$0xf0]  ;;  %v866_v44 = vld [vmem:[%s1876_s1 + $0x28] sm:$0xf0]  ;;  %v1005_v45 = vor.u32 %v1243_v35, %v1002_v36  ;;  %v1093_v46 = vor.u32 %v1265_v37, %v1090_v38 }
  0x28   :  { %555 = vmatpush.bf16.msrb.mxu0 %v1121_v63  ;;  %v1209_v43 = vld [vmem:[%s1876_s1 + $0x24] sm:$0xf]  ;;  %v930_v48 = vld [vmem:[%s1876_s1 + $0xa8] sm:$0xf0]  ;;  %v1707_v50 = vor.u32 %v1204_v40, %v844_v39  ;;  %v1263_v52 = vld [vmem:[%s1876_s1 + $0x1d4] sm:$0xf] }
  0x29   :  { %565 = vmatpush.bf16.msrb.mxu1 %v901_v1  ;;  %v1225_v47 = vld [vmem:[%s1876_s1 + $0xa4] sm:$0xf]  ;;  %v994_v51 = vld [vmem:[%s1876_s1 + $0x128] sm:$0xf0]  ;;  %v1082_v53 = vld [vmem:[%s1876_s1 + $0x1d8] sm:$0xf0]  ;;  %v869_v54 = vor.u32 %v1209_v43, %v866_v44 }
  0x2a   :  { %579 = vmatpush.bf16.msrb.mxu2 %v965_v2  ;;  %v1241_v49 = vld [vmem:[%s1876_s1 + $0x124] sm:$0xf]  ;;  %v933_v56 = vor.u32 %v1225_v47, %v930_v48  ;;  %v1207_v57 = vld [vmem:[%s1876_s1 + $0x14] sm:$0xf]  ;;  %v858_v58 = vld [vmem:[%s1876_s1 + $0x18] sm:$0xf0]  ;;  %v1085_v61 = vor.u32 %v1263_v52, %v1082_v53 }
  0x2b   :  { %593 = vmatpush.bf16.msrb.mxu3 %v1029_v6  ;;  %v997_v60 = vor.u32 %v1241_v49, %v994_v51  ;;  %v1223_v63 = vld [vmem:[%s1876_s1 + $0x94] sm:$0xf]  ;;  %v922_v1 = vld [vmem:[%s1876_s1 + $0x98] sm:$0xf0]  ;;  %v1261_v4 = vld [vmem:[%s1876_s1 + $0x1c4] sm:$0xf]  ;;  %v861_v6 = vor.u32 %v1207_v57, %v858_v58 }
  0x2c   :  { %556 = vmatpush.bf16.msrb.mxu0 %v1113_v12  ;;  %v1239_v2 = vld [vmem:[%s1876_s1 + $0x114] sm:$0xf]  ;;  %v986_v3 = vld [vmem:[%s1876_s1 + $0x118] sm:$0xf0]  ;;  %v1074_v5 = vld [vmem:[%s1876_s1 + $0x1c8] sm:$0xf0]  ;;  %v925_v7 = vor.u32 %v1223_v63, %v922_v1 }
  0x2d   :  { %566 = vmatpush.bf16.msrb.mxu1 %v893_v14  ;;  %v1205_v8 = vld [vmem:[%s1876_s1 + $0x4] sm:$0xf]  ;;  %v850_v9 = vld [vmem:[%s1876_s1 + $0x8] sm:$0xf0]  ;;  %v989_v10 = vor.u32 %v1239_v2, %v986_v3  ;;  %v1077_v11 = vor.u32 %v1261_v4, %v1074_v5  ;;  %v1259_v16 = vld [vmem:[%s1876_s1 + $0x1b4] sm:$0xf] }
  0x2e   :  { %580 = vmatpush.bf16.msrb.mxu2 %v957_v15  ;;  %v1221_v12 = vld [vmem:[%s1876_s1 + $0x84] sm:$0xf]  ;;  %v914_v13 = vld [vmem:[%s1876_s1 + $0x88] sm:$0xf0]  ;;  %v1066_v17 = vld [vmem:[%s1876_s1 + $0x1b8] sm:$0xf0]  ;;  %v853_v20 = vor.u32 %v1205_v8, %v850_v9 }
  0x2f   :  { %594 = vmatpush.bf16.msrb.mxu3 %v1021_v19  ;;  %v1237_v14 = vld [vmem:[%s1876_s1 + $0x104] sm:$0xf]  ;;  %v978_v15 = vld [vmem:[%s1876_s1 + $0x108] sm:$0xf0]  ;;  %v1275_v18 = vld [vmem:[%s1876_s1 + $0x234] sm:$0xf]  ;;  %v917_v21 = vor.u32 %v1221_v12, %v914_v13  ;;  %v1069_v23 = vor.u32 %v1259_v16, %v1066_v17 }
  0x30   :  { %557 = vmatpush.bf16.msrb.mxu0 %v1105_v26  ;;  %v1130_v19 = vld [vmem:[%s1876_s1 + $0x238] sm:$0xf0]  ;;  %v981_v22 = vor.u32 %v1237_v14, %v978_v15  ;;  %v1257_v25 = vld [vmem:[%s1876_s1 + $0x1a4] sm:$0xf]  ;;  %v1058_v26 = vld [vmem:[%s1876_s1 + $0x1a8] sm:$0xf0] }
  0x31   :  { %567 = vmatpush.bf16.msrb.mxu1 %v885_v27  ;;  %v1133_v24 = vor.u32 %v1275_v18, %v1130_v19  ;;  %v1273_v27 = vld [vmem:[%s1876_s1 + $0x224] sm:$0xf]  ;;  %v1061_v29 = vor.u32 %v1257_v25, %v1058_v26  ;;  %v1271_v33 = vld [vmem:[%s1876_s1 + $0x214] sm:$0xf]  ;;  %v1114_v34 = vld [vmem:[%s1876_s1 + $0x218] sm:$0xf0] }
  0x32   :  { %581 = vmatpush.bf16.msrb.mxu2 %v949_v28  ;;  %v1122_v28 = vld [vmem:[%s1876_s1 + $0x228] sm:$0xf0]  ;;  %v1117_v36 = vor.u32 %v1271_v33, %v1114_v34  ;;  %v1269_v37 = vld [vmem:[%s1876_s1 + $0x204] sm:$0xf]  ;;  %v1284_v40 = vld [vmem:[%s1879_s3 + $0x38] sm:$0xff] }
  0x33   :  { %595 = vmatpush.bf16.msrb.mxu3 %v1013_v31  ;;  %1134 = vmatmul.msk.bf16.vlgmr.msrb.gmra.mxu0 %vm490_vm0, %v1707_v50  ;;  %v1125_v30 = vor.u32 %v1273_v27, %v1122_v28  ;;  %v1255_v31 = vld [vmem:[%s1876_s1 + $0x194] sm:$0xf]  ;;  %v1280_v43 = vld [vmem:[%s1879_s3 + $0x18] sm:$0xff]  ;;  %v1290_v53 = vld [vmem:[%s1879_s3 + $0x68] sm:$0xff] }
  0x34   :  { %606 = vmatpush.bf16.msra.mxu0 %v1101_v32  ;;  %v1050_v32 = vld [vmem:[%s1876_s1 + $0x198] sm:$0xf0]  ;;  %v1279_v44 = vld [vmem:[%s1879_s3 + $0x10] sm:$0xff]  ;;  %v1285_v15 = vld [vmem:[%s1879_s3 + $0x40] sm:$0xff] }
  0x35   :  { %568 = vmatpush.bf16.msrb.mxu1 %v877_v41  ;;  %v1053_v35 = vor.u32 %v1255_v31, %v1050_v32  ;;  %v1283_v41 = vld [vmem:[%s1879_s3 + $0x30] sm:$0xff]  ;;  %v1292_v47 = vld [vmem:[%s1879_s3 + $0x78] sm:$0xff] }
  0x36   :  { %582 = vmatpush.bf16.msrb.mxu2 %v941_v42  ;;  %v1282_v42 = vld [vmem:[%s1879_s3 + $0x28] sm:$0xff]  ;;  %v1291_v49 = vld [vmem:[%s1879_s3 + $0x70] sm:$0xff]  ;;  %v1288_v2 = vld [vmem:[%s1879_s3 + $0x58] sm:$0xff] }
  0x37   :  { %596 = vmatpush.bf16.msrb.mxu3 %v1005_v45  ;;  %v1278_v45 = vld [vmem:[%s1879_s3 + $0x8] sm:$0xff] }
  0x38   :  { %607 = vmatpush.bf16.msra.mxu0 %v1093_v46  ;;  %v1277_v46 = vld [vmem:[%s1879_s3] sm:$0xff] }
  0x39   :  { %569 = vmatpush.bf16.msrb.mxu1 %v869_v54 }
  0x3a   :  { %583 = vmatpush.bf16.msrb.mxu2 %v933_v56  ;;  %v1289_v56 = vld [vmem:[%s1879_s3 + $0x60] sm:$0xff] }
  0x3b   :  { %597 = vmatpush.bf16.msrb.mxu3 %v997_v60 }
  0x3c   :  { %608 = vmatpush.bf16.msra.mxu0 %v1085_v61 }
  0x3d   :  { %570 = vmatpush.bf16.msrb.mxu1 %v861_v6 }
  0x3e   :  { %584 = vmatpush.bf16.msrb.mxu2 %v925_v7  ;;  %v1287_v7 = vld [vmem:[%s1879_s3 + $0x50] sm:$0xff] }
  0x3f   :  { %598 = vmatpush.bf16.msrb.mxu3 %v989_v10 }
  0x40   :  { %609 = vmatpush.bf16.msra.mxu0 %v1077_v11  ;;  %v1286_v11 = vld [vmem:[%s1879_s3 + $0x48] sm:$0xff] }
  0x41   :  { %571 = vmatpush.bf16.msrb.mxu1 %v853_v20 }
  0x42   :  { %585 = vmatpush.bf16.msrb.mxu2 %v917_v21 }
  0x43   :  { %599 = vmatpush.bf16.msrb.mxu3 %v981_v22 }
  0x44   :  { %610 = vmatpush.bf16.msra.mxu0 %v1069_v23  ;;  %572 = vmatmul.bf16.vlgmr.msrb.gmra.mxu1 %v1581_v55  ;;  %v1253_v55 = vld [vmem:[%s1876_s1 + $0x184] sm:$0xf] }
  0x45   :  { %624 = vmatpush.bf16.msra.mxu1 %v1133_v24  ;;  %586 = vmatmul.bf16.vlgmr.msrb.gmra.mxu2 %v1602_v0  ;;  %v1042_v0 = vld [vmem:[%s1876_s1 + $0x188] sm:$0xf0] }
  0x46   :  { %600 = vmatmul.bf16.vlgmr.msrb.gmra.mxu3 %v1592_v59  ;;  %v1106_v59 = vld [vmem:[%s1876_s1 + $0x208] sm:$0xf0]  ;;  %v1045_v38 = vor.u32 %v1253_v55, %v1042_v0  ;;  %772 = vmatpush.bf16.msra.mxu2 %v1284_v40 }
  0x47   :  { %v1109_v39 = vor.u32 %v1269_v37, %v1106_v59  ;;  %786 = vmatpush.bf16.msra.mxu3 %v1292_v47 }
  0x48   :  { %611 = vmatpush.bf16.msra.mxu0 %v1061_v29 }
  0x49   :  { %625 = vmatpush.bf16.msra.mxu1 %v1125_v30 }
  0x4a   :  { %773 = vmatpush.bf16.msra.mxu2 %v1283_v41 }
  0x4b   :  { %787 = vmatpush.bf16.msra.mxu3 %v1291_v49 }
  0x4c   :  { %612 = vmatpush.bf16.msra.mxu0 %v1053_v35 }
  0x4d   :  { %626 = vmatpush.bf16.msra.mxu1 %v1117_v36 }
  0x4e   :  { %774 = vmatpush.bf16.msra.mxu2 %v1282_v42  ;;  %v1293_v42 = vld [vmem:[%s1878_s4] ss:$0 sm:$0xff] }
  0x4f   :  { %788 = vmatpush.bf16.msra.mxu3 %v1290_v53 }
  0x50   :  { %613 = vmatpush.bf16.msra.mxu0 %v1045_v38 }
  0x51   :  { %627 = vmatpush.bf16.msra.mxu1 %v1109_v39 }
  0x53   :  { %614 = vmatmul.bf16.vlgmr.msra.gmra.mxu0 %v1600_v62  ;;  %v1281_v62 = vld [vmem:[%s1879_s3 + $0x20] sm:$0xff]  ;;  %789 = vmatpush.bf16.msra.mxu3 %v1289_v56 }
  0x54   :  { %1135 = vmatmul.msk.bf16.vlgmr.msra.gmra.mxu1 %vm490_vm0, %v1707_v50  ;;  %775 = vmatpush.bf16.msra.mxu2 %v1281_v62  ;;  %v99_v50 = vld [vmem:[%s1880_s2] sm:$0x3] }
  0x55   :  { %v101_v52 = vperm.slane %v99_v50, 0  ;;  %v102_v22 = vperm.slane %v99_v50, 1 }
  0x57   :  { %790 = vmatpush.bf16.msra.mxu3 %v1288_v2 }
  0x58   :  { %776 = vmatpush.bf16.msra.mxu2 %v1280_v43 }
  0x5b   :  { %791 = vmatpush.bf16.msra.mxu3 %v1287_v7 }
  0x5c   :  { %777 = vmatpush.bf16.msra.mxu2 %v1279_v44 }
  0x5f   :  { %792 = vmatpush.bf16.msra.mxu3 %v1286_v11 }
  0x60   :  { %778 = vmatpush.bf16.msra.mxu2 %v1278_v45 }
  0x63   :  { %793 = vmatpush.bf16.msra.mxu3 %v1285_v15 }
  0x64   :  { %779 = vmatpush.bf16.msra.mxu2 %v1277_v46 }
  0xa0   :  { %v503_v48 = vpop.f32.mrf.mxu0 }
  0xa1   :  { %v517_v51 = vpop.f32.mrf.mxu1  ;;  %v504_v57 = vadd.f32 %v503_v48, %v101_v52 }
  0xa3   :  { %v518_v61 = vadd.f32 %v517_v51, %v504_v57 }
  0xa8   :  { %v531_v54 = vpop.f32.mrf.mxu2  ;;  %v505_v58 = vpop.f32.mrf.mxu0 }
  0xa9   :  { %v545_v60 = vpop.f32.mrf.mxu3  ;;  %v506_v63 = vadd.f32 %v505_v58, %v101_v52  ;;  %v519_v1 = vpop.f32.mrf.mxu1  ;;  %v532_v3 = vadd.f32 %v531_v54, %v518_v61 }
  0xab   :  { %v520_v4 = vadd.f32 %v519_v1, %v506_v63  ;;  %v546_v8 = vadd.f32 %v545_v60, %v532_v3 }
  0xb0   :  { %v533_v5 = vpop.f32.mrf.mxu2  ;;  %v559_v6 = vpop.f32.mrf.mxu0 }
  0xb1   :  { %v534_v9 = vadd.f32 %v533_v5, %v520_v4  ;;  %v547_v10 = vpop.f32.mrf.mxu3  ;;  %v560_v12 = vadd.f32 %v559_v6, %v546_v8 }
  0xb3   :  { %v548_v13 = vadd.f32 %v547_v10, %v534_v9  ;;  %v634_v17 = vmax.f32 %v560_v12, 0.0 }
  0xb8   :  { %v561_v14 = vpop.f32.mrf.mxu0 }
  0xb9   :  { %v562_v16 = vadd.f32 %v561_v14, %v548_v13 }
  0xbb   :  { %v636_v18 = vmax.f32 %v562_v16, 0.0 }
  0xbd   :  { %v638_v19 = vpack.c.bf16 %v636_v18, %v634_v17 }
  0xbf   :  { %780 = vmatmul.bf16.vlgmr.msra.gmra.mxu2 %v638_v19 }
  0xc1   :  { %v573_v20 = vpop.f32.mrf.mxu1 }
  0xc2   :  { %v574_v25 = vadd.f32 %v573_v20, %v102_v22 }
  0xc8   :  { %v587_v21 = vpop.f32.mrf.mxu2 }
  0xc9   :  { %v575_v23 = vpop.f32.mrf.mxu1  ;;  %v601_v24 = vpop.f32.mrf.mxu3  ;;  %v588_v26 = vadd.f32 %v587_v21, %v574_v25 }
  0xca   :  { %v576_v28 = vadd.f32 %v575_v23, %v102_v22 }
  0xcb   :  { %v602_v32 = vadd.f32 %v601_v24, %v588_v26 }
  0xd0   :  { %v615_v27 = vpop.f32.mrf.mxu0  ;;  %v589_v29 = vpop.f32.mrf.mxu2 }
  0xd1   :  { %v590_v30 = vadd.f32 %v589_v29, %v576_v28  ;;  %v629_v31 = vpop.f32.mrf.mxu1  ;;  %v616_v33 = vadd.f32 %v615_v27, %v602_v32  ;;  %v603_v34 = vpop.f32.mrf.mxu3 }
  0xd3   :  { %v604_v35 = vadd.f32 %v603_v34, %v590_v30  ;;  %v630_v0 = vadd.f32 %v629_v31, %v616_v33 }
  0xd5   :  { %v635_v38 = vmax.f32 %v630_v0, 0.0 }
  0xd8   :  { %v617_v36 = vpop.f32.mrf.mxu0 }
  0xd9   :  { %v618_v55 = vadd.f32 %v617_v36, %v604_v35  ;;  %v631_v37 = vpop.f32.mrf.mxu1 }
  0xdb   :  { %v632_v59 = vadd.f32 %v631_v37, %v618_v55 }
  0xdd   :  { %v637_v39 = vmax.f32 %v632_v59, 0.0 }
  0xdf   :  { %v639_v40 = vpack.c.bf16 %v637_v39, %v635_v38 }
  0xe1   :  { %794 = vmatmul.bf16.vlgmr.msra.gmra.mxu3 %v639_v40 }
 0x142   :  { %v781_v41 = vpop.f32.mrf.mxu2 }
 0x143   :  { %v782_v62 = vadd.f32 %v1293_v42, %v781_v41 }
 0x14a   :  { %v783_v45 = vpop.f32.mrf.mxu2 }
 0x14b   :  { %v784_v46 = vadd.f32 %v1293_v42, %v783_v45 }
 0x164   :  { %v795_v43 = vpop.f32.mrf.mxu3 }
 0x165   :  { %v796_v44 = vadd.f32 %v795_v43, %v782_v62 }
 0x167   :  { %800 = vmax.xlane.f32.xlu0 %v796_v44 }
 0x16c   :  { %v797_v47 = vpop.f32.mrf.mxu3 }
 0x16d   :  { %v798_v48 = vadd.f32 %v797_v47, %v784_v46 }
 0x16f   :  { %802 = vmax.xlane.f32.xlu0 %v798_v48 }
 0x1da   :  { %v801_v49 = vpop.xlane.xlu0 %800 }
 0x1db   :  { %v804_v50 = vsub.f32 %v796_v44, %v801_v49 }
 0x1dd   :  { %v806_v51 = vmul.f32 1.442695, %v804_v50 }
 0x1df   :  { %1294 = vpow2.f32 %v806_v51 }
 0x1e2   :  { %v803_v52 = vpop.xlane.xlu0 %802 }
 0x1e3   :  { %v805_v53 = vsub.f32 %v798_v48, %v803_v52 }
 0x1e5   :  { %v1295_v54 = vpop.eup %1294  ;;  %v808_v56 = vmul.f32 1.442695, %v805_v53 }
 0x1e6   :  { %810 = vadd.xlane.f32.xlu1 %v1295_v54 }
 0x1e7   :  { %1296 = vpow2.f32 %v808_v56 }
 0x1ed   :  { %v1297_v57 = vpop.eup %1296 }
 0x1ee   :  { %812 = vadd.xlane.f32.xlu1 %v1297_v57 }
 0x259   :  { %v811_v58 = vpop.xlane.xlu1 %810 }
 0x25a   :  { %1298 = vlog2.f32 %v811_v58 }
 0x260   :  { %v1299_v60 = vpop.eup %1298 }
 0x261   :  { %v815_v61 = vmul.f32 0.6931472, %v1299_v60  ;;  %v813_v63 = vpop.xlane.xlu1 %812 }
 0x262   :  { %1300 = vlog2.f32 %v813_v63 }
 0x263   :  { %v818_v1 = vsub.f32 %v804_v50, %v815_v61 }
 0x265   :  { %820 = vst [vmem:[%s1881_s5] sm:$0xff] %v818_v1 }
 0x268   :  { %v1301_v2 = vpop.eup %1300 }
 0x269   :  { %v817_v3 = vmul.f32 0.6931472, %v1301_v2 }
 0x26b   :  { %v819_v4 = vsub.f32 %v805_v53, %v817_v3 }
 0x26d   :  { %821 = vst [vmem:[%s1881_s5 + $0x8] sm:$0xff] %v819_v4 }

</bundles_post_ra>
